<compile_context>
chip_gen: v6e
topology: v6e:2x2x1
jax: 0.10.0
libtpu: 0.0.40
codegen_flags: <defaults>
</compile_context>

<pallas_src>
import functools
import math

import jax
import jax.numpy as jnp
from jax import lax
from jax.experimental import pallas as pl
from jax.experimental.pallas import tpu as pltpu

# ---- tiny synthetic BERT config ----
VOCAB = 100
MAX_POS = 32
HIDDEN = 32
NUM_LAYERS = 2
NUM_HEADS = 4
HEAD_DIM = HIDDEN // NUM_HEADS
INTERMEDIATE = 64
NUM_CLASSES = 5
LN_EPS = 1e-12
MASK_BIAS = -10000.0
OUT_PAD = 128          # lane-dense logits tile (classifier weight zero-padded to 128 lanes)


# ---------------- in-kernel helpers (f32 math) ----------------

def _layer_norm(x, g, b):
    mu = jnp.mean(x, axis=-1, keepdims=True)
    var = jnp.mean(jnp.square(x - mu), axis=-1, keepdims=True)
    return (x - mu) * lax.rsqrt(var + LN_EPS) * g + b


def _gelu(x):
    # exact (erf-based) GELU, as used by BERT / torch.nn.GELU default
    return 0.5 * x * (1.0 + lax.erf(x * (1.0 / math.sqrt(2.0))))


# ---------------- fused per-sample encoder + classifier kernel ----------------

def _encoder_kernel(mask_ref, emb_ref, eg_ref, eb_ref,
                    qkvw_ref, qkvb_ref, ow_ref, ob_ref,
                    l1g_ref, l1b_ref, iw_ref, ib_ref,
                    fw_ref, fb_ref, l2g_ref, l2b_ref,
                    cw_ref, cb_ref, out_ref):
    scale = 1.0 / math.sqrt(HEAD_DIM)

    # Embedding LayerNorm for this sample's rows.
    x = _layer_norm(emb_ref[0], eg_ref[...], eb_ref[...])          # [S, H]

    # HF-style additive key mask for this sample: (1 - mask) * -10000,
    # broadcast over query rows.  Hoisted out of the layer/head loops.
    bias = (1.0 - mask_ref[0]) * MASK_BIAS                         # [1, S]

    for l in range(NUM_LAYERS):                                    # unrolled (L=2)
        # ---- fused QKV projection: one [S,H] @ [H,3H] MXU pass ----
        qkv = (jnp.dot(x, qkvw_ref[l], preferred_element_type=jnp.float32)
               + qkvb_ref[l])                                      # [S, 3H]
        q = qkv[:, 0 * HIDDEN:1 * HIDDEN]
        k = qkv[:, 1 * HIDDEN:2 * HIDDEN]
        v = qkv[:, 2 * HIDDEN:3 * HIDDEN]

        # ---- multi-head attention; heads via static lane slices (HEAD_DIM=8).
        #      Scores in NT form (no kh.T); per-head contexts concatenated so the
        #      output projection is a single K=HIDDEN matmul. ----
        ctx = []
        for h in range(NUM_HEADS):                                 # unrolled (NH=4)
            hs = slice(h * HEAD_DIM, (h + 1) * HEAD_DIM)
            qh, kh, vh = q[:, hs], k[:, hs], v[:, hs]
            s = lax.dot_general(qh, kh, (((1,), (1,)), ((), ())),
                                preferred_element_type=jnp.float32) * scale + bias
            s = s - jnp.max(s, axis=-1, keepdims=True)
            p = jnp.exp(s)
            p = p / jnp.sum(p, axis=-1, keepdims=True)   # exact divide (reference parity)
            ctx.append(jnp.dot(p, vh, preferred_element_type=jnp.float32))
        ctx = jnp.concatenate(ctx, axis=-1)                        # [S, H]

        attn = (jnp.dot(ctx, ow_ref[l], preferred_element_type=jnp.float32)
                + ob_ref[l])

        # ---- residual + LN1 ----
        x = _layer_norm(attn + x, l1g_ref[l], l1b_ref[l])

        # ---- FFN (GELU) + residual + LN2 ----
        inter = _gelu(jnp.dot(x, iw_ref[l], preferred_element_type=jnp.float32)
                      + ib_ref[l])
        ffn = jnp.dot(inter, fw_ref[l], preferred_element_type=jnp.float32) + fb_ref[l]
        x = _layer_norm(ffn + x, l2g_ref[l], l2b_ref[l])

    # Lane-dense (128-wide, zero-padded) classifier logits for all S rows:
    # full-tile unmasked store; the wrapper keeps only the CLS row / first 5 lanes.
    out_ref[0] = (jnp.dot(x, cw_ref[...], preferred_element_type=jnp.float32)
                  + cb_ref[...])


# ---------------- parameter init (deterministic, synthetic) ----------------
# TODO(synk): BertModel.from_pretrained() weight loading has no self-contained
#             equivalent; deterministic synthetic weights of the same shape are used.

def init_params(key):
    def nrm(k, shape):
        return jax.random.normal(k, shape, dtype=jnp.float32) * 0.02

    n_keys = 8 + NUM_LAYERS * 16
    keys = list(jax.random.split(key, n_keys))
    ki = iter(keys)

    params = {
        "tok_emb": nrm(next(ki), (VOCAB, HIDDEN)),
        "pos_emb": nrm(next(ki), (MAX_POS, HIDDEN)),
        "typ_emb": nrm(next(ki), (2, HIDDEN)),
        "emb_ln_g": jnp.ones((HIDDEN,), jnp.float32),
        "emb_ln_b": jnp.zeros((HIDDEN,), jnp.float32),
        "cls_w": nrm(next(ki), (HIDDEN, NUM_CLASSES)),
        "cls_b": jnp.zeros((NUM_CLASSES,), jnp.float32),
        "layers": [],
    }
    for _ in range(NUM_LAYERS):
        layer = {
            "q_w": nrm(next(ki), (HIDDEN, HIDDEN)), "q_b": jnp.zeros((HIDDEN,), jnp.float32),
            "k_w": nrm(next(ki), (HIDDEN, HIDDEN)), "k_b": jnp.zeros((HIDDEN,), jnp.float32),
            "v_w": nrm(next(ki), (HIDDEN, HIDDEN)), "v_b": jnp.zeros((HIDDEN,), jnp.float32),
            "o_w": nrm(next(ki), (HIDDEN, HIDDEN)), "o_b": jnp.zeros((HIDDEN,), jnp.float32),
            "ln1_g": jnp.ones((HIDDEN,), jnp.float32), "ln1_b": jnp.zeros((HIDDEN,), jnp.float32),
            "i_w": nrm(next(ki), (HIDDEN, INTERMEDIATE)), "i_b": jnp.zeros((INTERMEDIATE,), jnp.float32),
            "f_w": nrm(next(ki), (INTERMEDIATE, HIDDEN)), "f_b": jnp.zeros((HIDDEN,), jnp.float32),
            "ln2_g": jnp.ones((HIDDEN,), jnp.float32), "ln2_b": jnp.zeros((HIDDEN,), jnp.float32),
        }
        params["layers"].append(layer)
    return params


# ------------- one-time weight packing (hoisted out of the call path) -------------

def pack_params(params):
    layers = params["layers"]

    def stack(fn):
        return jnp.stack([fn(ly) for ly in layers])

    cls_w_pad = jnp.zeros((HIDDEN, OUT_PAD), jnp.float32).at[:, :NUM_CLASSES].set(params["cls_w"])
    cls_b_pad = jnp.zeros((1, OUT_PAD), jnp.float32).at[:, :NUM_CLASSES].set(params["cls_b"])

    return {
        "tok_emb": params["tok_emb"],
        "pos_emb": params["pos_emb"],
        "typ_emb": params["typ_emb"],
        "emb_ln_g": params["emb_ln_g"][None, :],
        "emb_ln_b": params["emb_ln_b"][None, :],
        # fused QKV, stacked along a leading layer axis
        "qkv_w": stack(lambda ly: jnp.concatenate([ly["q_w"], ly["k_w"], ly["v_w"]], axis=1)),   # [L,H,3H]
        "qkv_b": stack(lambda ly: jnp.concatenate([ly["q_b"], ly["k_b"], ly["v_b"]])[None, :]),  # [L,1,3H]
        "o_w": stack(lambda ly: ly["o_w"]),                       # [L,H,H]
        "o_b": stack(lambda ly: ly["o_b"][None, :]),              # [L,1,H]
        "ln1_g": stack(lambda ly: ly["ln1_g"][None, :]),
        "ln1_b": stack(lambda ly: ly["ln1_b"][None, :]),
        "i_w": stack(lambda ly: ly["i_w"]),                       # [L,H,I]
        "i_b": stack(lambda ly: ly["i_b"][None, :]),              # [L,1,I]
        "f_w": stack(lambda ly: ly["f_w"]),                       # [L,I,H]
        "f_b": stack(lambda ly: ly["f_b"][None, :]),              # [L,1,H]
        "ln2_g": stack(lambda ly: ly["ln2_g"][None, :]),
        "ln2_b": stack(lambda ly: ly["ln2_b"][None, :]),
        "cls_w": cls_w_pad,                                       # [H, 128]
        "cls_b": cls_b_pad,                                       # [1, 128]
    }


# ---------------- forward pass (TitleClassifier semantics) ----------------

def title_classifier_forward(packed, input_ids, attention_mask):
    B, S = input_ids.shape

    # BERT embeddings: token + position + token_type(0); the gather stays in XLA glue.
    # TODO(synk): dropout layers are omitted (eval-mode / inference semantics).
    emb = (jnp.take(packed["tok_emb"], input_ids, axis=0)
           + packed["pos_emb"][None, :S, :]
           + packed["typ_emb"][0][None, None, :])                 # [B, S, H]

    mask = attention_mask.astype(jnp.float32).reshape(B, 1, S)    # [B, 1, S]

    weights = (packed["emb_ln_g"], packed["emb_ln_b"],
               packed["qkv_w"], packed["qkv_b"], packed["o_w"], packed["o_b"],
               packed["ln1_g"], packed["ln1_b"], packed["i_w"], packed["i_b"],
               packed["f_w"], packed["f_b"], packed["ln2_g"], packed["ln2_b"],
               packed["cls_w"], packed["cls_b"])

    def _full_spec(a):                      # whole (layer-stacked) weight, VMEM-resident
        nd = a.ndim
        return pl.BlockSpec(a.shape, lambda b, _nd=nd: (0,) * _nd)

    out = pl.pallas_call(
        _encoder_kernel,
        out_shape=jax.ShapeDtypeStruct((B, S, OUT_PAD), jnp.float32),
        grid=(B,),                          # one sample per grid step; shards across v7x TCs
        in_specs=[pl.BlockSpec((1, 1, S), lambda b: (b, 0, 0)),          # per-sample mask
                  pl.BlockSpec((1, S, HIDDEN), lambda b: (b, 0, 0))]     # per-sample embeddings
                 + [_full_spec(w) for w in weights],
        out_specs=pl.BlockSpec((1, S, OUT_PAD), lambda b: (b, 0, 0)),
        compiler_params=pltpu.CompilerParams(
            dimension_semantics=("parallel",)),
    )(mask, emb, *weights)

    # last_hidden_state[:, 0, :] -> classifier: CLS row, first NUM_CLASSES lanes.
    return out[:, 0, :NUM_CLASSES]


if __name__ == "__main__":
    key = jax.random.PRNGKey(0)
    B, S = 2, 8

    params = init_params(key)
    packed = pack_params(params)            # packed once, reused for every forward call

    ids_key, _ = jax.random.split(key)
    input_ids = jax.random.randint(ids_key, (B, S), 0, VOCAB, dtype=jnp.int32)
    attention_mask = jnp.ones((B, S), dtype=jnp.int32)
    attention_mask = attention_mask.at[1, 6:].set(0)   # pad the tail of sample 1

    fwd = jax.jit(title_classifier_forward)
    logits = fwd(packed, input_ids, attention_mask)
    jax.block_until_ready(logits)
    assert logits.shape == (B, NUM_CLASSES)
    assert logits.dtype == jnp.float32
    print("KERNEL_OK")
</pallas_src>

<mosaic_0001>
module attributes {stable_mosaic.version = 11 : i64} {
  func.func @_encoder_kernel(%arg0: i32, %arg1: memref<1x1x8xf32, #tpu.memory_space<vmem>>, %arg2: memref<1x8x32xf32, #tpu.memory_space<vmem>>, %arg3: memref<1x32xf32, #tpu.memory_space<vmem>>, %arg4: memref<1x32xf32, #tpu.memory_space<vmem>>, %arg5: memref<2x32x96xf32, #tpu.memory_space<vmem>>, %arg6: memref<2x1x96xf32, #tpu.memory_space<vmem>>, %arg7: memref<2x32x32xf32, #tpu.memory_space<vmem>>, %arg8: memref<2x1x32xf32, #tpu.memory_space<vmem>>, %arg9: memref<2x1x32xf32, #tpu.memory_space<vmem>>, %arg10: memref<2x1x32xf32, #tpu.memory_space<vmem>>, %arg11: memref<2x32x64xf32, #tpu.memory_space<vmem>>, %arg12: memref<2x1x64xf32, #tpu.memory_space<vmem>>, %arg13: memref<2x64x32xf32, #tpu.memory_space<vmem>>, %arg14: memref<2x1x32xf32, #tpu.memory_space<vmem>>, %arg15: memref<2x1x32xf32, #tpu.memory_space<vmem>>, %arg16: memref<2x1x32xf32, #tpu.memory_space<vmem>>, %arg17: memref<32x128xf32, #tpu.memory_space<vmem>>, %arg18: memref<1x128xf32, #tpu.memory_space<vmem>>, %arg19: memref<1x8x128xf32, #tpu.memory_space<vmem>>) attributes {dimension_semantics = [#tpu.dimension_semantics<parallel>], iteration_bounds = array<i64: 2>, scalar_prefetch = 0 : i64, scratch_operands = 0 : i64, tpu.core_type = #tpu.core_type<tc>, window_params = [{transform_indices = @transform_0, window_bounds = array<i64: 1, 1, 8>}, {transform_indices = @transform_1, window_bounds = array<i64: 1, 8, 32>}, {pipeline_mode = #tpu.pipeline_mode<synchronous>, transform_indices = @transform_2, window_bounds = array<i64: 1, 32>}, {pipeline_mode = #tpu.pipeline_mode<synchronous>, transform_indices = @transform_3, window_bounds = array<i64: 1, 32>}, {pipeline_mode = #tpu.pipeline_mode<synchronous>, transform_indices = @transform_4, window_bounds = array<i64: 2, 32, 96>}, {pipeline_mode = #tpu.pipeline_mode<synchronous>, transform_indices = @transform_5, window_bounds = array<i64: 2, 1, 96>}, {pipeline_mode = #tpu.pipeline_mode<synchronous>, transform_indices = @transform_6, window_bounds = array<i64: 2, 32, 32>}, {pipeline_mode = #tpu.pipeline_mode<synchronous>, transform_indices = @transform_7, window_bounds = array<i64: 2, 1, 32>}, {pipeline_mode = #tpu.pipeline_mode<synchronous>, transform_indices = @transform_8, window_bounds = array<i64: 2, 1, 32>}, {pipeline_mode = #tpu.pipeline_mode<synchronous>, transform_indices = @transform_9, window_bounds = array<i64: 2, 1, 32>}, {pipeline_mode = #tpu.pipeline_mode<synchronous>, transform_indices = @transform_10, window_bounds = array<i64: 2, 32, 64>}, {pipeline_mode = #tpu.pipeline_mode<synchronous>, transform_indices = @transform_11, window_bounds = array<i64: 2, 1, 64>}, {pipeline_mode = #tpu.pipeline_mode<synchronous>, transform_indices = @transform_12, window_bounds = array<i64: 2, 64, 32>}, {pipeline_mode = #tpu.pipeline_mode<synchronous>, transform_indices = @transform_13, window_bounds = array<i64: 2, 1, 32>}, {pipeline_mode = #tpu.pipeline_mode<synchronous>, transform_indices = @transform_14, window_bounds = array<i64: 2, 1, 32>}, {pipeline_mode = #tpu.pipeline_mode<synchronous>, transform_indices = @transform_15, window_bounds = array<i64: 2, 1, 32>}, {pipeline_mode = #tpu.pipeline_mode<synchronous>, transform_indices = @transform_16, window_bounds = array<i64: 32, 128>}, {pipeline_mode = #tpu.pipeline_mode<synchronous>, transform_indices = @transform_17, window_bounds = array<i64: 1, 128>}, {transform_indices = @transform_18, window_bounds = array<i64: 1, 8, 128>}]} {
    %c0 = arith.constant 0 : index
    %c0_0 = arith.constant 0 : index
    %c0_1 = arith.constant 0 : index
    %0 = vector.load %arg2[%c0, %c0_0, %c0_1] : memref<1x8x32xf32, #tpu.memory_space<vmem>>, vector<1x8x32xf32>
    %1 = vector.shape_cast %0 : vector<1x8x32xf32> to vector<8x32xf32>
    %c0_2 = arith.constant 0 : index
    %c0_3 = arith.constant 0 : index
    %2 = vector.load %arg3[%c0_2, %c0_3] : memref<1x32xf32, #tpu.memory_space<vmem>>, vector<1x32xf32>
    %c0_4 = arith.constant 0 : index
    %c0_5 = arith.constant 0 : index
    %3 = vector.load %arg4[%c0_4, %c0_5] : memref<1x32xf32, #tpu.memory_space<vmem>>, vector<1x32xf32>
    %cst = arith.constant dense<0.000000e+00> : vector<8xf32>
    %4 = vector.multi_reduction <add>, %1, %cst [1] : vector<8x32xf32> to vector<8xf32>
    %5 = vector.shape_cast %4 : vector<8xf32> to vector<8x1xf32>
    %cst_6 = arith.constant 3.200000e+01 : f32
    %6 = vector.broadcast %cst_6 : f32 to vector<8x1xf32>
    %7 = arith.divf %5, %6 : vector<8x1xf32>
    %8 = vector.broadcast %7 : vector<8x1xf32> to vector<8x32xf32>
    %9 = arith.subf %1, %8 : vector<8x32xf32>
    %10 = arith.mulf %9, %9 : vector<8x32xf32>
    %cst_7 = arith.constant dense<0.000000e+00> : vector<8xf32>
    %11 = vector.multi_reduction <add>, %10, %cst_7 [1] : vector<8x32xf32> to vector<8xf32>
    %12 = vector.shape_cast %11 : vector<8xf32> to vector<8x1xf32>
    %cst_8 = arith.constant 3.200000e+01 : f32
    %13 = vector.broadcast %cst_8 : f32 to vector<8x1xf32>
    %14 = arith.divf %12, %13 : vector<8x1xf32>
    %15 = vector.broadcast %7 : vector<8x1xf32> to vector<8x32xf32>
    %16 = arith.subf %1, %15 : vector<8x32xf32>
    %cst_9 = arith.constant 9.99999996E-13 : f32
    %17 = vector.broadcast %cst_9 : f32 to vector<8x1xf32>
    %18 = arith.addf %14, %17 : vector<8x1xf32>
    %19 = math.rsqrt %18 : vector<8x1xf32>
    %20 = vector.broadcast %19 : vector<8x1xf32> to vector<8x32xf32>
    %21 = arith.mulf %16, %20 : vector<8x32xf32>
    %22 = vector.broadcast %2 : vector<1x32xf32> to vector<8x32xf32>
    %23 = arith.mulf %21, %22 : vector<8x32xf32>
    %24 = vector.broadcast %3 : vector<1x32xf32> to vector<8x32xf32>
    %25 = arith.addf %23, %24 : vector<8x32xf32>
    %c0_10 = arith.constant 0 : index
    %c0_11 = arith.constant 0 : index
    %c0_12 = arith.constant 0 : index
    %26 = vector.load %arg1[%c0_10, %c0_11, %c0_12] : memref<1x1x8xf32, #tpu.memory_space<vmem>>, vector<1x1x8xf32>
    %27 = vector.shape_cast %26 : vector<1x1x8xf32> to vector<1x8xf32>
    %cst_13 = arith.constant 1.000000e+00 : f32
    %28 = vector.broadcast %cst_13 : f32 to vector<1x8xf32>
    %29 = arith.subf %28, %27 : vector<1x8xf32>
    %cst_14 = arith.constant -1.000000e+04 : f32
    %30 = vector.broadcast %cst_14 : f32 to vector<1x8xf32>
    %31 = arith.mulf %29, %30 : vector<1x8xf32>
    %c0_15 = arith.constant 0 : index
    %c0_16 = arith.constant 0 : index
    %c0_17 = arith.constant 0 : index
    %32 = vector.load %arg5[%c0_15, %c0_16, %c0_17] : memref<2x32x96xf32, #tpu.memory_space<vmem>>, vector<1x32x96xf32>
    %33 = vector.shape_cast %32 : vector<1x32x96xf32> to vector<32x96xf32>
    %cst_18 = arith.constant dense<0.000000e+00> : vector<8x96xf32>
    %34 = tpu.matmul %25, %33, %cst_18 {dimension_numbers = #tpu.dot_dimension_numbers<[1], [0], [0], [1], [0, 0, 1, 1], [], []>} : vector<8x32xf32>, vector<32x96xf32>, vector<8x96xf32> -> vector<8x96xf32>
    %c0_19 = arith.constant 0 : index
    %c0_20 = arith.constant 0 : index
    %c0_21 = arith.constant 0 : index
    %35 = vector.load %arg6[%c0_19, %c0_20, %c0_21] : memref<2x1x96xf32, #tpu.memory_space<vmem>>, vector<1x1x96xf32>
    %36 = vector.shape_cast %35 : vector<1x1x96xf32> to vector<1x96xf32>
    %37 = vector.broadcast %36 : vector<1x96xf32> to vector<8x96xf32>
    %38 = arith.addf %34, %37 : vector<8x96xf32>
    %39 = vector.extract_strided_slice %38 {offsets = [0, 0], sizes = [8, 32], strides = [1, 1]} : vector<8x96xf32> to vector<8x32xf32>
    %40 = vector.extract_strided_slice %38 {offsets = [0, 32], sizes = [8, 32], strides = [1, 1]} : vector<8x96xf32> to vector<8x32xf32>
    %41 = vector.extract_strided_slice %38 {offsets = [0, 64], sizes = [8, 32], strides = [1, 1]} : vector<8x96xf32> to vector<8x32xf32>
    %42 = vector.extract_strided_slice %39 {offsets = [0, 0], sizes = [8, 8], strides = [1, 1]} : vector<8x32xf32> to vector<8x8xf32>
    %43 = vector.extract_strided_slice %40 {offsets = [0, 0], sizes = [8, 8], strides = [1, 1]} : vector<8x32xf32> to vector<8x8xf32>
    %44 = vector.extract_strided_slice %41 {offsets = [0, 0], sizes = [8, 8], strides = [1, 1]} : vector<8x32xf32> to vector<8x8xf32>
    %cst_22 = arith.constant dense<0.000000e+00> : vector<8x8xf32>
    %45 = tpu.matmul %42, %43, %cst_22 {dimension_numbers = #tpu.dot_dimension_numbers<[1], [1], [0], [0], [0, 0, 1, 0], [], []>} : vector<8x8xf32>, vector<8x8xf32>, vector<8x8xf32> -> vector<8x8xf32>
    %cst_23 = arith.constant 0.353553385 : f32
    %46 = vector.broadcast %cst_23 : f32 to vector<8x8xf32>
    %47 = arith.mulf %45, %46 : vector<8x8xf32>
    %48 = vector.broadcast %31 : vector<1x8xf32> to vector<8x8xf32>
    %49 = arith.addf %47, %48 : vector<8x8xf32>
    %cst_24 = arith.constant dense<0xFF800000> : vector<8xf32>
    %50 = vector.multi_reduction <maximumf>, %49, %cst_24 [1] : vector<8x8xf32> to vector<8xf32>
    %51 = vector.shape_cast %50 : vector<8xf32> to vector<8x1xf32>
    %52 = vector.broadcast %51 : vector<8x1xf32> to vector<8x8xf32>
    %53 = arith.subf %49, %52 : vector<8x8xf32>
    %54 = math.exp %53 : vector<8x8xf32>
    %cst_25 = arith.constant dense<0.000000e+00> : vector<8xf32>
    %55 = vector.multi_reduction <add>, %54, %cst_25 [1] : vector<8x8xf32> to vector<8xf32>
    %56 = vector.shape_cast %55 : vector<8xf32> to vector<8x1xf32>
    %57 = vector.broadcast %56 : vector<8x1xf32> to vector<8x8xf32>
    %58 = arith.divf %54, %57 : vector<8x8xf32>
    %cst_26 = arith.constant dense<0.000000e+00> : vector<8x8xf32>
    %59 = tpu.matmul %58, %44, %cst_26 {dimension_numbers = #tpu.dot_dimension_numbers<[1], [0], [0], [1], [0, 0, 1, 1], [], []>} : vector<8x8xf32>, vector<8x8xf32>, vector<8x8xf32> -> vector<8x8xf32>
    %60 = vector.extract_strided_slice %39 {offsets = [0, 8], sizes = [8, 8], strides = [1, 1]} : vector<8x32xf32> to vector<8x8xf32>
    %61 = vector.extract_strided_slice %40 {offsets = [0, 8], sizes = [8, 8], strides = [1, 1]} : vector<8x32xf32> to vector<8x8xf32>
    %62 = vector.extract_strided_slice %41 {offsets = [0, 8], sizes = [8, 8], strides = [1, 1]} : vector<8x32xf32> to vector<8x8xf32>
    %cst_27 = arith.constant dense<0.000000e+00> : vector<8x8xf32>
    %63 = tpu.matmul %60, %61, %cst_27 {dimension_numbers = #tpu.dot_dimension_numbers<[1], [1], [0], [0], [0, 0, 1, 0], [], []>} : vector<8x8xf32>, vector<8x8xf32>, vector<8x8xf32> -> vector<8x8xf32>
    %cst_28 = arith.constant 0.353553385 : f32
    %64 = vector.broadcast %cst_28 : f32 to vector<8x8xf32>
    %65 = arith.mulf %63, %64 : vector<8x8xf32>
    %66 = vector.broadcast %31 : vector<1x8xf32> to vector<8x8xf32>
    %67 = arith.addf %65, %66 : vector<8x8xf32>
    %cst_29 = arith.constant dense<0xFF800000> : vector<8xf32>
    %68 = vector.multi_reduction <maximumf>, %67, %cst_29 [1] : vector<8x8xf32> to vector<8xf32>
    %69 = vector.shape_cast %68 : vector<8xf32> to vector<8x1xf32>
    %70 = vector.broadcast %69 : vector<8x1xf32> to vector<8x8xf32>
    %71 = arith.subf %67, %70 : vector<8x8xf32>
    %72 = math.exp %71 : vector<8x8xf32>
    %cst_30 = arith.constant dense<0.000000e+00> : vector<8xf32>
    %73 = vector.multi_reduction <add>, %72, %cst_30 [1] : vector<8x8xf32> to vector<8xf32>
    %74 = vector.shape_cast %73 : vector<8xf32> to vector<8x1xf32>
    %75 = vector.broadcast %74 : vector<8x1xf32> to vector<8x8xf32>
    %76 = arith.divf %72, %75 : vector<8x8xf32>
    %cst_31 = arith.constant dense<0.000000e+00> : vector<8x8xf32>
    %77 = tpu.matmul %76, %62, %cst_31 {dimension_numbers = #tpu.dot_dimension_numbers<[1], [0], [0], [1], [0, 0, 1, 1], [], []>} : vector<8x8xf32>, vector<8x8xf32>, vector<8x8xf32> -> vector<8x8xf32>
    %78 = vector.extract_strided_slice %39 {offsets = [0, 16], sizes = [8, 8], strides = [1, 1]} : vector<8x32xf32> to vector<8x8xf32>
    %79 = vector.extract_strided_slice %40 {offsets = [0, 16], sizes = [8, 8], strides = [1, 1]} : vector<8x32xf32> to vector<8x8xf32>
    %80 = vector.extract_strided_slice %41 {offsets = [0, 16], sizes = [8, 8], strides = [1, 1]} : vector<8x32xf32> to vector<8x8xf32>
    %cst_32 = arith.constant dense<0.000000e+00> : vector<8x8xf32>
    %81 = tpu.matmul %78, %79, %cst_32 {dimension_numbers = #tpu.dot_dimension_numbers<[1], [1], [0], [0], [0, 0, 1, 0], [], []>} : vector<8x8xf32>, vector<8x8xf32>, vector<8x8xf32> -> vector<8x8xf32>
    %cst_33 = arith.constant 0.353553385 : f32
    %82 = vector.broadcast %cst_33 : f32 to vector<8x8xf32>
    %83 = arith.mulf %81, %82 : vector<8x8xf32>
    %84 = vector.broadcast %31 : vector<1x8xf32> to vector<8x8xf32>
    %85 = arith.addf %83, %84 : vector<8x8xf32>
    %cst_34 = arith.constant dense<0xFF800000> : vector<8xf32>
    %86 = vector.multi_reduction <maximumf>, %85, %cst_34 [1] : vector<8x8xf32> to vector<8xf32>
    %87 = vector.shape_cast %86 : vector<8xf32> to vector<8x1xf32>
    %88 = vector.broadcast %87 : vector<8x1xf32> to vector<8x8xf32>
    %89 = arith.subf %85, %88 : vector<8x8xf32>
    %90 = math.exp %89 : vector<8x8xf32>
    %cst_35 = arith.constant dense<0.000000e+00> : vector<8xf32>
    %91 = vector.multi_reduction <add>, %90, %cst_35 [1] : vector<8x8xf32> to vector<8xf32>
    %92 = vector.shape_cast %91 : vector<8xf32> to vector<8x1xf32>
    %93 = vector.broadcast %92 : vector<8x1xf32> to vector<8x8xf32>
    %94 = arith.divf %90, %93 : vector<8x8xf32>
    %cst_36 = arith.constant dense<0.000000e+00> : vector<8x8xf32>
    %95 = tpu.matmul %94, %80, %cst_36 {dimension_numbers = #tpu.dot_dimension_numbers<[1], [0], [0], [1], [0, 0, 1, 1], [], []>} : vector<8x8xf32>, vector<8x8xf32>, vector<8x8xf32> -> vector<8x8xf32>
    %96 = vector.extract_strided_slice %39 {offsets = [0, 24], sizes = [8, 8], strides = [1, 1]} : vector<8x32xf32> to vector<8x8xf32>
    %97 = vector.extract_strided_slice %40 {offsets = [0, 24], sizes = [8, 8], strides = [1, 1]} : vector<8x32xf32> to vector<8x8xf32>
    %98 = vector.extract_strided_slice %41 {offsets = [0, 24], sizes = [8, 8], strides = [1, 1]} : vector<8x32xf32> to vector<8x8xf32>
    %cst_37 = arith.constant dense<0.000000e+00> : vector<8x8xf32>
    %99 = tpu.matmul %96, %97, %cst_37 {dimension_numbers = #tpu.dot_dimension_numbers<[1], [1], [0], [0], [0, 0, 1, 0], [], []>} : vector<8x8xf32>, vector<8x8xf32>, vector<8x8xf32> -> vector<8x8xf32>
    %cst_38 = arith.constant 0.353553385 : f32
    %100 = vector.broadcast %cst_38 : f32 to vector<8x8xf32>
    %101 = arith.mulf %99, %100 : vector<8x8xf32>
    %102 = vector.broadcast %31 : vector<1x8xf32> to vector<8x8xf32>
    %103 = arith.addf %101, %102 : vector<8x8xf32>
    %cst_39 = arith.constant dense<0xFF800000> : vector<8xf32>
    %104 = vector.multi_reduction <maximumf>, %103, %cst_39 [1] : vector<8x8xf32> to vector<8xf32>
    %105 = vector.shape_cast %104 : vector<8xf32> to vector<8x1xf32>
    %106 = vector.broadcast %105 : vector<8x1xf32> to vector<8x8xf32>
    %107 = arith.subf %103, %106 : vector<8x8xf32>
    %108 = math.exp %107 : vector<8x8xf32>
    %cst_40 = arith.constant dense<0.000000e+00> : vector<8xf32>
    %109 = vector.multi_reduction <add>, %108, %cst_40 [1] : vector<8x8xf32> to vector<8xf32>
    %110 = vector.shape_cast %109 : vector<8xf32> to vector<8x1xf32>
    %111 = vector.broadcast %110 : vector<8x1xf32> to vector<8x8xf32>
    %112 = arith.divf %108, %111 : vector<8x8xf32>
    %cst_41 = arith.constant dense<0.000000e+00> : vector<8x8xf32>
    %113 = tpu.matmul %112, %98, %cst_41 {dimension_numbers = #tpu.dot_dimension_numbers<[1], [0], [0], [1], [0, 0, 1, 1], [], []>} : vector<8x8xf32>, vector<8x8xf32>, vector<8x8xf32> -> vector<8x8xf32>
    %114 = tpu.concatenate %59, %77, %95, %113 in 1 : vector<8x8xf32>, vector<8x8xf32>, vector<8x8xf32>, vector<8x8xf32> -> vector<8x32xf32>
    %c0_42 = arith.constant 0 : index
    %c0_43 = arith.constant 0 : index
    %c0_44 = arith.constant 0 : index
    %115 = vector.load %arg7[%c0_42, %c0_43, %c0_44] : memref<2x32x32xf32, #tpu.memory_space<vmem>>, vector<1x32x32xf32>
    %116 = vector.shape_cast %115 : vector<1x32x32xf32> to vector<32x32xf32>
    %cst_45 = arith.constant dense<0.000000e+00> : vector<8x32xf32>
    %117 = tpu.matmul %114, %116, %cst_45 {dimension_numbers = #tpu.dot_dimension_numbers<[1], [0], [0], [1], [0, 0, 1, 1], [], []>} : vector<8x32xf32>, vector<32x32xf32>, vector<8x32xf32> -> vector<8x32xf32>
    %c0_46 = arith.constant 0 : index
    %c0_47 = arith.constant 0 : index
    %c0_48 = arith.constant 0 : index
    %118 = vector.load %arg8[%c0_46, %c0_47, %c0_48] : memref<2x1x32xf32, #tpu.memory_space<vmem>>, vector<1x1x32xf32>
    %119 = vector.shape_cast %118 : vector<1x1x32xf32> to vector<1x32xf32>
    %120 = vector.broadcast %119 : vector<1x32xf32> to vector<8x32xf32>
    %121 = arith.addf %117, %120 : vector<8x32xf32>
    %122 = arith.addf %121, %25 : vector<8x32xf32>
    %c0_49 = arith.constant 0 : index
    %c0_50 = arith.constant 0 : index
    %c0_51 = arith.constant 0 : index
    %123 = vector.load %arg9[%c0_49, %c0_50, %c0_51] : memref<2x1x32xf32, #tpu.memory_space<vmem>>, vector<1x1x32xf32>
    %124 = vector.shape_cast %123 : vector<1x1x32xf32> to vector<1x32xf32>
    %c0_52 = arith.constant 0 : index
    %c0_53 = arith.constant 0 : index
    %c0_54 = arith.constant 0 : index
    %125 = vector.load %arg10[%c0_52, %c0_53, %c0_54] : memref<2x1x32xf32, #tpu.memory_space<vmem>>, vector<1x1x32xf32>
    %126 = vector.shape_cast %125 : vector<1x1x32xf32> to vector<1x32xf32>
    %cst_55 = arith.constant dense<0.000000e+00> : vector<8xf32>
    %127 = vector.multi_reduction <add>, %122, %cst_55 [1] : vector<8x32xf32> to vector<8xf32>
    %128 = vector.shape_cast %127 : vector<8xf32> to vector<8x1xf32>
    %cst_56 = arith.constant 3.200000e+01 : f32
    %129 = vector.broadcast %cst_56 : f32 to vector<8x1xf32>
    %130 = arith.divf %128, %129 : vector<8x1xf32>
    %131 = vector.broadcast %130 : vector<8x1xf32> to vector<8x32xf32>
    %132 = arith.subf %122, %131 : vector<8x32xf32>
    %133 = arith.mulf %132, %132 : vector<8x32xf32>
    %cst_57 = arith.constant dense<0.000000e+00> : vector<8xf32>
    %134 = vector.multi_reduction <add>, %133, %cst_57 [1] : vector<8x32xf32> to vector<8xf32>
    %135 = vector.shape_cast %134 : vector<8xf32> to vector<8x1xf32>
    %cst_58 = arith.constant 3.200000e+01 : f32
    %136 = vector.broadcast %cst_58 : f32 to vector<8x1xf32>
    %137 = arith.divf %135, %136 : vector<8x1xf32>
    %138 = vector.broadcast %130 : vector<8x1xf32> to vector<8x32xf32>
    %139 = arith.subf %122, %138 : vector<8x32xf32>
    %cst_59 = arith.constant 9.99999996E-13 : f32
    %140 = vector.broadcast %cst_59 : f32 to vector<8x1xf32>
    %141 = arith.addf %137, %140 : vector<8x1xf32>
    %142 = math.rsqrt %141 : vector<8x1xf32>
    %143 = vector.broadcast %142 : vector<8x1xf32> to vector<8x32xf32>
    %144 = arith.mulf %139, %143 : vector<8x32xf32>
    %145 = vector.broadcast %124 : vector<1x32xf32> to vector<8x32xf32>
    %146 = arith.mulf %144, %145 : vector<8x32xf32>
    %147 = vector.broadcast %126 : vector<1x32xf32> to vector<8x32xf32>
    %148 = arith.addf %146, %147 : vector<8x32xf32>
    %c0_60 = arith.constant 0 : index
    %c0_61 = arith.constant 0 : index
    %c0_62 = arith.constant 0 : index
    %149 = vector.load %arg11[%c0_60, %c0_61, %c0_62] : memref<2x32x64xf32, #tpu.memory_space<vmem>>, vector<1x32x64xf32>
    %150 = vector.shape_cast %149 : vector<1x32x64xf32> to vector<32x64xf32>
    %cst_63 = arith.constant dense<0.000000e+00> : vector<8x64xf32>
    %151 = tpu.matmul %148, %150, %cst_63 {dimension_numbers = #tpu.dot_dimension_numbers<[1], [0], [0], [1], [0, 0, 1, 1], [], []>} : vector<8x32xf32>, vector<32x64xf32>, vector<8x64xf32> -> vector<8x64xf32>
    %c0_64 = arith.constant 0 : index
    %c0_65 = arith.constant 0 : index
    %c0_66 = arith.constant 0 : index
    %152 = vector.load %arg12[%c0_64, %c0_65, %c0_66] : memref<2x1x64xf32, #tpu.memory_space<vmem>>, vector<1x1x64xf32>
    %153 = vector.shape_cast %152 : vector<1x1x64xf32> to vector<1x64xf32>
    %154 = vector.broadcast %153 : vector<1x64xf32> to vector<8x64xf32>
    %155 = arith.addf %151, %154 : vector<8x64xf32>
    %cst_67 = arith.constant 5.000000e-01 : f32
    %156 = vector.broadcast %cst_67 : f32 to vector<8x64xf32>
    %157 = arith.mulf %156, %155 : vector<8x64xf32>
    %cst_68 = arith.constant 0.707106769 : f32
    %158 = vector.broadcast %cst_68 : f32 to vector<8x64xf32>
    %159 = arith.mulf %155, %158 : vector<8x64xf32>
    %160 = math.erf %159 : vector<8x64xf32>
    %cst_69 = arith.constant 1.000000e+00 : f32
    %161 = vector.broadcast %cst_69 : f32 to vector<8x64xf32>
    %162 = arith.addf %161, %160 : vector<8x64xf32>
    %163 = arith.mulf %157, %162 : vector<8x64xf32>
    %c0_70 = arith.constant 0 : index
    %c0_71 = arith.constant 0 : index
    %c0_72 = arith.constant 0 : index
    %164 = vector.load %arg13[%c0_70, %c0_71, %c0_72] : memref<2x64x32xf32, #tpu.memory_space<vmem>>, vector<1x64x32xf32>
    %165 = vector.shape_cast %164 : vector<1x64x32xf32> to vector<64x32xf32>
    %cst_73 = arith.constant dense<0.000000e+00> : vector<8x32xf32>
    %166 = tpu.matmul %163, %165, %cst_73 {dimension_numbers = #tpu.dot_dimension_numbers<[1], [0], [0], [1], [0, 0, 1, 1], [], []>} : vector<8x64xf32>, vector<64x32xf32>, vector<8x32xf32> -> vector<8x32xf32>
    %c0_74 = arith.constant 0 : index
    %c0_75 = arith.constant 0 : index
    %c0_76 = arith.constant 0 : index
    %167 = vector.load %arg14[%c0_74, %c0_75, %c0_76] : memref<2x1x32xf32, #tpu.memory_space<vmem>>, vector<1x1x32xf32>
    %168 = vector.shape_cast %167 : vector<1x1x32xf32> to vector<1x32xf32>
    %169 = vector.broadcast %168 : vector<1x32xf32> to vector<8x32xf32>
    %170 = arith.addf %166, %169 : vector<8x32xf32>
    %171 = arith.addf %170, %148 : vector<8x32xf32>
    %c0_77 = arith.constant 0 : index
    %c0_78 = arith.constant 0 : index
    %c0_79 = arith.constant 0 : index
    %172 = vector.load %arg15[%c0_77, %c0_78, %c0_79] : memref<2x1x32xf32, #tpu.memory_space<vmem>>, vector<1x1x32xf32>
    %173 = vector.shape_cast %172 : vector<1x1x32xf32> to vector<1x32xf32>
    %c0_80 = arith.constant 0 : index
    %c0_81 = arith.constant 0 : index
    %c0_82 = arith.constant 0 : index
    %174 = vector.load %arg16[%c0_80, %c0_81, %c0_82] : memref<2x1x32xf32, #tpu.memory_space<vmem>>, vector<1x1x32xf32>
    %175 = vector.shape_cast %174 : vector<1x1x32xf32> to vector<1x32xf32>
    %cst_83 = arith.constant dense<0.000000e+00> : vector<8xf32>
    %176 = vector.multi_reduction <add>, %171, %cst_83 [1] : vector<8x32xf32> to vector<8xf32>
    %177 = vector.shape_cast %176 : vector<8xf32> to vector<8x1xf32>
    %cst_84 = arith.constant 3.200000e+01 : f32
    %178 = vector.broadcast %cst_84 : f32 to vector<8x1xf32>
    %179 = arith.divf %177, %178 : vector<8x1xf32>
    %180 = vector.broadcast %179 : vector<8x1xf32> to vector<8x32xf32>
    %181 = arith.subf %171, %180 : vector<8x32xf32>
    %182 = arith.mulf %181, %181 : vector<8x32xf32>
    %cst_85 = arith.constant dense<0.000000e+00> : vector<8xf32>
    %183 = vector.multi_reduction <add>, %182, %cst_85 [1] : vector<8x32xf32> to vector<8xf32>
    %184 = vector.shape_cast %183 : vector<8xf32> to vector<8x1xf32>
    %cst_86 = arith.constant 3.200000e+01 : f32
    %185 = vector.broadcast %cst_86 : f32 to vector<8x1xf32>
    %186 = arith.divf %184, %185 : vector<8x1xf32>
    %187 = vector.broadcast %179 : vector<8x1xf32> to vector<8x32xf32>
    %188 = arith.subf %171, %187 : vector<8x32xf32>
    %cst_87 = arith.constant 9.99999996E-13 : f32
    %189 = vector.broadcast %cst_87 : f32 to vector<8x1xf32>
    %190 = arith.addf %186, %189 : vector<8x1xf32>
    %191 = math.rsqrt %190 : vector<8x1xf32>
    %192 = vector.broadcast %191 : vector<8x1xf32> to vector<8x32xf32>
    %193 = arith.mulf %188, %192 : vector<8x32xf32>
    %194 = vector.broadcast %173 : vector<1x32xf32> to vector<8x32xf32>
    %195 = arith.mulf %193, %194 : vector<8x32xf32>
    %196 = vector.broadcast %175 : vector<1x32xf32> to vector<8x32xf32>
    %197 = arith.addf %195, %196 : vector<8x32xf32>
    %c1 = arith.constant 1 : index
    %c0_88 = arith.constant 0 : index
    %c0_89 = arith.constant 0 : index
    %198 = vector.load %arg5[%c1, %c0_88, %c0_89] : memref<2x32x96xf32, #tpu.memory_space<vmem>>, vector<1x32x96xf32>
    %199 = vector.shape_cast %198 : vector<1x32x96xf32> to vector<32x96xf32>
    %cst_90 = arith.constant dense<0.000000e+00> : vector<8x96xf32>
    %200 = tpu.matmul %197, %199, %cst_90 {dimension_numbers = #tpu.dot_dimension_numbers<[1], [0], [0], [1], [0, 0, 1, 1], [], []>} : vector<8x32xf32>, vector<32x96xf32>, vector<8x96xf32> -> vector<8x96xf32>
    %c1_91 = arith.constant 1 : index
    %c0_92 = arith.constant 0 : index
    %c0_93 = arith.constant 0 : index
    %201 = vector.load %arg6[%c1_91, %c0_92, %c0_93] : memref<2x1x96xf32, #tpu.memory_space<vmem>>, vector<1x1x96xf32>
    %202 = vector.shape_cast %201 : vector<1x1x96xf32> to vector<1x96xf32>
    %203 = vector.broadcast %202 : vector<1x96xf32> to vector<8x96xf32>
    %204 = arith.addf %200, %203 : vector<8x96xf32>
    %205 = vector.extract_strided_slice %204 {offsets = [0, 0], sizes = [8, 32], strides = [1, 1]} : vector<8x96xf32> to vector<8x32xf32>
    %206 = vector.extract_strided_slice %204 {offsets = [0, 32], sizes = [8, 32], strides = [1, 1]} : vector<8x96xf32> to vector<8x32xf32>
    %207 = vector.extract_strided_slice %204 {offsets = [0, 64], sizes = [8, 32], strides = [1, 1]} : vector<8x96xf32> to vector<8x32xf32>
    %208 = vector.extract_strided_slice %205 {offsets = [0, 0], sizes = [8, 8], strides = [1, 1]} : vector<8x32xf32> to vector<8x8xf32>
    %209 = vector.extract_strided_slice %206 {offsets = [0, 0], sizes = [8, 8], strides = [1, 1]} : vector<8x32xf32> to vector<8x8xf32>
    %210 = vector.extract_strided_slice %207 {offsets = [0, 0], sizes = [8, 8], strides = [1, 1]} : vector<8x32xf32> to vector<8x8xf32>
    %cst_94 = arith.constant dense<0.000000e+00> : vector<8x8xf32>
    %211 = tpu.matmul %208, %209, %cst_94 {dimension_numbers = #tpu.dot_dimension_numbers<[1], [1], [0], [0], [0, 0, 1, 0], [], []>} : vector<8x8xf32>, vector<8x8xf32>, vector<8x8xf32> -> vector<8x8xf32>
    %cst_95 = arith.constant 0.353553385 : f32
    %212 = vector.broadcast %cst_95 : f32 to vector<8x8xf32>
    %213 = arith.mulf %211, %212 : vector<8x8xf32>
    %214 = vector.broadcast %31 : vector<1x8xf32> to vector<8x8xf32>
    %215 = arith.addf %213, %214 : vector<8x8xf32>
    %cst_96 = arith.constant dense<0xFF800000> : vector<8xf32>
    %216 = vector.multi_reduction <maximumf>, %215, %cst_96 [1] : vector<8x8xf32> to vector<8xf32>
    %217 = vector.shape_cast %216 : vector<8xf32> to vector<8x1xf32>
    %218 = vector.broadcast %217 : vector<8x1xf32> to vector<8x8xf32>
    %219 = arith.subf %215, %218 : vector<8x8xf32>
    %220 = math.exp %219 : vector<8x8xf32>
    %cst_97 = arith.constant dense<0.000000e+00> : vector<8xf32>
    %221 = vector.multi_reduction <add>, %220, %cst_97 [1] : vector<8x8xf32> to vector<8xf32>
    %222 = vector.shape_cast %221 : vector<8xf32> to vector<8x1xf32>
    %223 = vector.broadcast %222 : vector<8x1xf32> to vector<8x8xf32>
    %224 = arith.divf %220, %223 : vector<8x8xf32>
    %cst_98 = arith.constant dense<0.000000e+00> : vector<8x8xf32>
    %225 = tpu.matmul %224, %210, %cst_98 {dimension_numbers = #tpu.dot_dimension_numbers<[1], [0], [0], [1], [0, 0, 1, 1], [], []>} : vector<8x8xf32>, vector<8x8xf32>, vector<8x8xf32> -> vector<8x8xf32>
    %226 = vector.extract_strided_slice %205 {offsets = [0, 8], sizes = [8, 8], strides = [1, 1]} : vector<8x32xf32> to vector<8x8xf32>
    %227 = vector.extract_strided_slice %206 {offsets = [0, 8], sizes = [8, 8], strides = [1, 1]} : vector<8x32xf32> to vector<8x8xf32>
    %228 = vector.extract_strided_slice %207 {offsets = [0, 8], sizes = [8, 8], strides = [1, 1]} : vector<8x32xf32> to vector<8x8xf32>
    %cst_99 = arith.constant dense<0.000000e+00> : vector<8x8xf32>
    %229 = tpu.matmul %226, %227, %cst_99 {dimension_numbers = #tpu.dot_dimension_numbers<[1], [1], [0], [0], [0, 0, 1, 0], [], []>} : vector<8x8xf32>, vector<8x8xf32>, vector<8x8xf32> -> vector<8x8xf32>
    %cst_100 = arith.constant 0.353553385 : f32
    %230 = vector.broadcast %cst_100 : f32 to vector<8x8xf32>
    %231 = arith.mulf %229, %230 : vector<8x8xf32>
    %232 = vector.broadcast %31 : vector<1x8xf32> to vector<8x8xf32>
    %233 = arith.addf %231, %232 : vector<8x8xf32>
    %cst_101 = arith.constant dense<0xFF800000> : vector<8xf32>
    %234 = vector.multi_reduction <maximumf>, %233, %cst_101 [1] : vector<8x8xf32> to vector<8xf32>
    %235 = vector.shape_cast %234 : vector<8xf32> to vector<8x1xf32>
    %236 = vector.broadcast %235 : vector<8x1xf32> to vector<8x8xf32>
    %237 = arith.subf %233, %236 : vector<8x8xf32>
    %238 = math.exp %237 : vector<8x8xf32>
    %cst_102 = arith.constant dense<0.000000e+00> : vector<8xf32>
    %239 = vector.multi_reduction <add>, %238, %cst_102 [1] : vector<8x8xf32> to vector<8xf32>
    %240 = vector.shape_cast %239 : vector<8xf32> to vector<8x1xf32>
    %241 = vector.broadcast %240 : vector<8x1xf32> to vector<8x8xf32>
    %242 = arith.divf %238, %241 : vector<8x8xf32>
    %cst_103 = arith.constant dense<0.000000e+00> : vector<8x8xf32>
    %243 = tpu.matmul %242, %228, %cst_103 {dimension_numbers = #tpu.dot_dimension_numbers<[1], [0], [0], [1], [0, 0, 1, 1], [], []>} : vector<8x8xf32>, vector<8x8xf32>, vector<8x8xf32> -> vector<8x8xf32>
    %244 = vector.extract_strided_slice %205 {offsets = [0, 16], sizes = [8, 8], strides = [1, 1]} : vector<8x32xf32> to vector<8x8xf32>
    %245 = vector.extract_strided_slice %206 {offsets = [0, 16], sizes = [8, 8], strides = [1, 1]} : vector<8x32xf32> to vector<8x8xf32>
    %246 = vector.extract_strided_slice %207 {offsets = [0, 16], sizes = [8, 8], strides = [1, 1]} : vector<8x32xf32> to vector<8x8xf32>
    %cst_104 = arith.constant dense<0.000000e+00> : vector<8x8xf32>
    %247 = tpu.matmul %244, %245, %cst_104 {dimension_numbers = #tpu.dot_dimension_numbers<[1], [1], [0], [0], [0, 0, 1, 0], [], []>} : vector<8x8xf32>, vector<8x8xf32>, vector<8x8xf32> -> vector<8x8xf32>
    %cst_105 = arith.constant 0.353553385 : f32
    %248 = vector.broadcast %cst_105 : f32 to vector<8x8xf32>
    %249 = arith.mulf %247, %248 : vector<8x8xf32>
    %250 = vector.broadcast %31 : vector<1x8xf32> to vector<8x8xf32>
    %251 = arith.addf %249, %250 : vector<8x8xf32>
    %cst_106 = arith.constant dense<0xFF800000> : vector<8xf32>
    %252 = vector.multi_reduction <maximumf>, %251, %cst_106 [1] : vector<8x8xf32> to vector<8xf32>
    %253 = vector.shape_cast %252 : vector<8xf32> to vector<8x1xf32>
    %254 = vector.broadcast %253 : vector<8x1xf32> to vector<8x8xf32>
    %255 = arith.subf %251, %254 : vector<8x8xf32>
    %256 = math.exp %255 : vector<8x8xf32>
    %cst_107 = arith.constant dense<0.000000e+00> : vector<8xf32>
    %257 = vector.multi_reduction <add>, %256, %cst_107 [1] : vector<8x8xf32> to vector<8xf32>
    %258 = vector.shape_cast %257 : vector<8xf32> to vector<8x1xf32>
    %259 = vector.broadcast %258 : vector<8x1xf32> to vector<8x8xf32>
    %260 = arith.divf %256, %259 : vector<8x8xf32>
    %cst_108 = arith.constant dense<0.000000e+00> : vector<8x8xf32>
    %261 = tpu.matmul %260, %246, %cst_108 {dimension_numbers = #tpu.dot_dimension_numbers<[1], [0], [0], [1], [0, 0, 1, 1], [], []>} : vector<8x8xf32>, vector<8x8xf32>, vector<8x8xf32> -> vector<8x8xf32>
    %262 = vector.extract_strided_slice %205 {offsets = [0, 24], sizes = [8, 8], strides = [1, 1]} : vector<8x32xf32> to vector<8x8xf32>
    %263 = vector.extract_strided_slice %206 {offsets = [0, 24], sizes = [8, 8], strides = [1, 1]} : vector<8x32xf32> to vector<8x8xf32>
    %264 = vector.extract_strided_slice %207 {offsets = [0, 24], sizes = [8, 8], strides = [1, 1]} : vector<8x32xf32> to vector<8x8xf32>
    %cst_109 = arith.constant dense<0.000000e+00> : vector<8x8xf32>
    %265 = tpu.matmul %262, %263, %cst_109 {dimension_numbers = #tpu.dot_dimension_numbers<[1], [1], [0], [0], [0, 0, 1, 0], [], []>} : vector<8x8xf32>, vector<8x8xf32>, vector<8x8xf32> -> vector<8x8xf32>
    %cst_110 = arith.constant 0.353553385 : f32
    %266 = vector.broadcast %cst_110 : f32 to vector<8x8xf32>
    %267 = arith.mulf %265, %266 : vector<8x8xf32>
    %268 = vector.broadcast %31 : vector<1x8xf32> to vector<8x8xf32>
    %269 = arith.addf %267, %268 : vector<8x8xf32>
    %cst_111 = arith.constant dense<0xFF800000> : vector<8xf32>
    %270 = vector.multi_reduction <maximumf>, %269, %cst_111 [1] : vector<8x8xf32> to vector<8xf32>
    %271 = vector.shape_cast %270 : vector<8xf32> to vector<8x1xf32>
    %272 = vector.broadcast %271 : vector<8x1xf32> to vector<8x8xf32>
    %273 = arith.subf %269, %272 : vector<8x8xf32>
    %274 = math.exp %273 : vector<8x8xf32>
    %cst_112 = arith.constant dense<0.000000e+00> : vector<8xf32>
    %275 = vector.multi_reduction <add>, %274, %cst_112 [1] : vector<8x8xf32> to vector<8xf32>
    %276 = vector.shape_cast %275 : vector<8xf32> to vector<8x1xf32>
    %277 = vector.broadcast %276 : vector<8x1xf32> to vector<8x8xf32>
    %278 = arith.divf %274, %277 : vector<8x8xf32>
    %cst_113 = arith.constant dense<0.000000e+00> : vector<8x8xf32>
    %279 = tpu.matmul %278, %264, %cst_113 {dimension_numbers = #tpu.dot_dimension_numbers<[1], [0], [0], [1], [0, 0, 1, 1], [], []>} : vector<8x8xf32>, vector<8x8xf32>, vector<8x8xf32> -> vector<8x8xf32>
    %280 = tpu.concatenate %225, %243, %261, %279 in 1 : vector<8x8xf32>, vector<8x8xf32>, vector<8x8xf32>, vector<8x8xf32> -> vector<8x32xf32>
    %c1_114 = arith.constant 1 : index
    %c0_115 = arith.constant 0 : index
    %c0_116 = arith.constant 0 : index
    %281 = vector.load %arg7[%c1_114, %c0_115, %c0_116] : memref<2x32x32xf32, #tpu.memory_space<vmem>>, vector<1x32x32xf32>
    %282 = vector.shape_cast %281 : vector<1x32x32xf32> to vector<32x32xf32>
    %cst_117 = arith.constant dense<0.000000e+00> : vector<8x32xf32>
    %283 = tpu.matmul %280, %282, %cst_117 {dimension_numbers = #tpu.dot_dimension_numbers<[1], [0], [0], [1], [0, 0, 1, 1], [], []>} : vector<8x32xf32>, vector<32x32xf32>, vector<8x32xf32> -> vector<8x32xf32>
    %c1_118 = arith.constant 1 : index
    %c0_119 = arith.constant 0 : index
    %c0_120 = arith.constant 0 : index
    %284 = vector.load %arg8[%c1_118, %c0_119, %c0_120] : memref<2x1x32xf32, #tpu.memory_space<vmem>>, vector<1x1x32xf32>
    %285 = vector.shape_cast %284 : vector<1x1x32xf32> to vector<1x32xf32>
    %286 = vector.broadcast %285 : vector<1x32xf32> to vector<8x32xf32>
    %287 = arith.addf %283, %286 : vector<8x32xf32>
    %288 = arith.addf %287, %197 : vector<8x32xf32>
    %c1_121 = arith.constant 1 : index
    %c0_122 = arith.constant 0 : index
    %c0_123 = arith.constant 0 : index
    %289 = vector.load %arg9[%c1_121, %c0_122, %c0_123] : memref<2x1x32xf32, #tpu.memory_space<vmem>>, vector<1x1x32xf32>
    %290 = vector.shape_cast %289 : vector<1x1x32xf32> to vector<1x32xf32>
    %c1_124 = arith.constant 1 : index
    %c0_125 = arith.constant 0 : index
    %c0_126 = arith.constant 0 : index
    %291 = vector.load %arg10[%c1_124, %c0_125, %c0_126] : memref<2x1x32xf32, #tpu.memory_space<vmem>>, vector<1x1x32xf32>
    %292 = vector.shape_cast %291 : vector<1x1x32xf32> to vector<1x32xf32>
    %cst_127 = arith.constant dense<0.000000e+00> : vector<8xf32>
    %293 = vector.multi_reduction <add>, %288, %cst_127 [1] : vector<8x32xf32> to vector<8xf32>
    %294 = vector.shape_cast %293 : vector<8xf32> to vector<8x1xf32>
    %cst_128 = arith.constant 3.200000e+01 : f32
    %295 = vector.broadcast %cst_128 : f32 to vector<8x1xf32>
    %296 = arith.divf %294, %295 : vector<8x1xf32>
    %297 = vector.broadcast %296 : vector<8x1xf32> to vector<8x32xf32>
    %298 = arith.subf %288, %297 : vector<8x32xf32>
    %299 = arith.mulf %298, %298 : vector<8x32xf32>
    %cst_129 = arith.constant dense<0.000000e+00> : vector<8xf32>
    %300 = vector.multi_reduction <add>, %299, %cst_129 [1] : vector<8x32xf32> to vector<8xf32>
    %301 = vector.shape_cast %300 : vector<8xf32> to vector<8x1xf32>
    %cst_130 = arith.constant 3.200000e+01 : f32
    %302 = vector.broadcast %cst_130 : f32 to vector<8x1xf32>
    %303 = arith.divf %301, %302 : vector<8x1xf32>
    %304 = vector.broadcast %296 : vector<8x1xf32> to vector<8x32xf32>
    %305 = arith.subf %288, %304 : vector<8x32xf32>
    %cst_131 = arith.constant 9.99999996E-13 : f32
    %306 = vector.broadcast %cst_131 : f32 to vector<8x1xf32>
    %307 = arith.addf %303, %306 : vector<8x1xf32>
    %308 = math.rsqrt %307 : vector<8x1xf32>
    %309 = vector.broadcast %308 : vector<8x1xf32> to vector<8x32xf32>
    %310 = arith.mulf %305, %309 : vector<8x32xf32>
    %311 = vector.broadcast %290 : vector<1x32xf32> to vector<8x32xf32>
    %312 = arith.mulf %310, %311 : vector<8x32xf32>
    %313 = vector.broadcast %292 : vector<1x32xf32> to vector<8x32xf32>
    %314 = arith.addf %312, %313 : vector<8x32xf32>
    %c1_132 = arith.constant 1 : index
    %c0_133 = arith.constant 0 : index
    %c0_134 = arith.constant 0 : index
    %315 = vector.load %arg11[%c1_132, %c0_133, %c0_134] : memref<2x32x64xf32, #tpu.memory_space<vmem>>, vector<1x32x64xf32>
    %316 = vector.shape_cast %315 : vector<1x32x64xf32> to vector<32x64xf32>
    %cst_135 = arith.constant dense<0.000000e+00> : vector<8x64xf32>
    %317 = tpu.matmul %314, %316, %cst_135 {dimension_numbers = #tpu.dot_dimension_numbers<[1], [0], [0], [1], [0, 0, 1, 1], [], []>} : vector<8x32xf32>, vector<32x64xf32>, vector<8x64xf32> -> vector<8x64xf32>
    %c1_136 = arith.constant 1 : index
    %c0_137 = arith.constant 0 : index
    %c0_138 = arith.constant 0 : index
    %318 = vector.load %arg12[%c1_136, %c0_137, %c0_138] : memref<2x1x64xf32, #tpu.memory_space<vmem>>, vector<1x1x64xf32>
    %319 = vector.shape_cast %318 : vector<1x1x64xf32> to vector<1x64xf32>
    %320 = vector.broadcast %319 : vector<1x64xf32> to vector<8x64xf32>
    %321 = arith.addf %317, %320 : vector<8x64xf32>
    %cst_139 = arith.constant 5.000000e-01 : f32
    %322 = vector.broadcast %cst_139 : f32 to vector<8x64xf32>
    %323 = arith.mulf %322, %321 : vector<8x64xf32>
    %cst_140 = arith.constant 0.707106769 : f32
    %324 = vector.broadcast %cst_140 : f32 to vector<8x64xf32>
    %325 = arith.mulf %321, %324 : vector<8x64xf32>
    %326 = math.erf %325 : vector<8x64xf32>
    %cst_141 = arith.constant 1.000000e+00 : f32
    %327 = vector.broadcast %cst_141 : f32 to vector<8x64xf32>
    %328 = arith.addf %327, %326 : vector<8x64xf32>
    %329 = arith.mulf %323, %328 : vector<8x64xf32>
    %c1_142 = arith.constant 1 : index
    %c0_143 = arith.constant 0 : index
    %c0_144 = arith.constant 0 : index
    %330 = vector.load %arg13[%c1_142, %c0_143, %c0_144] : memref<2x64x32xf32, #tpu.memory_space<vmem>>, vector<1x64x32xf32>
    %331 = vector.shape_cast %330 : vector<1x64x32xf32> to vector<64x32xf32>
    %cst_145 = arith.constant dense<0.000000e+00> : vector<8x32xf32>
    %332 = tpu.matmul %329, %331, %cst_145 {dimension_numbers = #tpu.dot_dimension_numbers<[1], [0], [0], [1], [0, 0, 1, 1], [], []>} : vector<8x64xf32>, vector<64x32xf32>, vector<8x32xf32> -> vector<8x32xf32>
    %c1_146 = arith.constant 1 : index
    %c0_147 = arith.constant 0 : index
    %c0_148 = arith.constant 0 : index
    %333 = vector.load %arg14[%c1_146, %c0_147, %c0_148] : memref<2x1x32xf32, #tpu.memory_space<vmem>>, vector<1x1x32xf32>
    %334 = vector.shape_cast %333 : vector<1x1x32xf32> to vector<1x32xf32>
    %335 = vector.broadcast %334 : vector<1x32xf32> to vector<8x32xf32>
    %336 = arith.addf %332, %335 : vector<8x32xf32>
    %337 = arith.addf %336, %314 : vector<8x32xf32>
    %c1_149 = arith.constant 1 : index
    %c0_150 = arith.constant 0 : index
    %c0_151 = arith.constant 0 : index
    %338 = vector.load %arg15[%c1_149, %c0_150, %c0_151] : memref<2x1x32xf32, #tpu.memory_space<vmem>>, vector<1x1x32xf32>
    %339 = vector.shape_cast %338 : vector<1x1x32xf32> to vector<1x32xf32>
    %c1_152 = arith.constant 1 : index
    %c0_153 = arith.constant 0 : index
    %c0_154 = arith.constant 0 : index
    %340 = vector.load %arg16[%c1_152, %c0_153, %c0_154] : memref<2x1x32xf32, #tpu.memory_space<vmem>>, vector<1x1x32xf32>
    %341 = vector.shape_cast %340 : vector<1x1x32xf32> to vector<1x32xf32>
    %cst_155 = arith.constant dense<0.000000e+00> : vector<8xf32>
    %342 = vector.multi_reduction <add>, %337, %cst_155 [1] : vector<8x32xf32> to vector<8xf32>
    %343 = vector.shape_cast %342 : vector<8xf32> to vector<8x1xf32>
    %cst_156 = arith.constant 3.200000e+01 : f32
    %344 = vector.broadcast %cst_156 : f32 to vector<8x1xf32>
    %345 = arith.divf %343, %344 : vector<8x1xf32>
    %346 = vector.broadcast %345 : vector<8x1xf32> to vector<8x32xf32>
    %347 = arith.subf %337, %346 : vector<8x32xf32>
    %348 = arith.mulf %347, %347 : vector<8x32xf32>
    %cst_157 = arith.constant dense<0.000000e+00> : vector<8xf32>
    %349 = vector.multi_reduction <add>, %348, %cst_157 [1] : vector<8x32xf32> to vector<8xf32>
    %350 = vector.shape_cast %349 : vector<8xf32> to vector<8x1xf32>
    %cst_158 = arith.constant 3.200000e+01 : f32
    %351 = vector.broadcast %cst_158 : f32 to vector<8x1xf32>
    %352 = arith.divf %350, %351 : vector<8x1xf32>
    %353 = vector.broadcast %345 : vector<8x1xf32> to vector<8x32xf32>
    %354 = arith.subf %337, %353 : vector<8x32xf32>
    %cst_159 = arith.constant 9.99999996E-13 : f32
    %355 = vector.broadcast %cst_159 : f32 to vector<8x1xf32>
    %356 = arith.addf %352, %355 : vector<8x1xf32>
    %357 = math.rsqrt %356 : vector<8x1xf32>
    %358 = vector.broadcast %357 : vector<8x1xf32> to vector<8x32xf32>
    %359 = arith.mulf %354, %358 : vector<8x32xf32>
    %360 = vector.broadcast %339 : vector<1x32xf32> to vector<8x32xf32>
    %361 = arith.mulf %359, %360 : vector<8x32xf32>
    %362 = vector.broadcast %341 : vector<1x32xf32> to vector<8x32xf32>
    %363 = arith.addf %361, %362 : vector<8x32xf32>
    %c0_160 = arith.constant 0 : index
    %c0_161 = arith.constant 0 : index
    %364 = vector.load %arg17[%c0_160, %c0_161] : memref<32x128xf32, #tpu.memory_space<vmem>>, vector<32x128xf32>
    %cst_162 = arith.constant dense<0.000000e+00> : vector<8x128xf32>
    %365 = tpu.matmul %363, %364, %cst_162 {dimension_numbers = #tpu.dot_dimension_numbers<[1], [0], [0], [1], [0, 0, 1, 1], [], []>} : vector<8x32xf32>, vector<32x128xf32>, vector<8x128xf32> -> vector<8x128xf32>
    %c0_163 = arith.constant 0 : index
    %c0_164 = arith.constant 0 : index
    %366 = vector.load %arg18[%c0_163, %c0_164] : memref<1x128xf32, #tpu.memory_space<vmem>>, vector<1x128xf32>
    %367 = vector.broadcast %366 : vector<1x128xf32> to vector<8x128xf32>
    %368 = arith.addf %365, %367 : vector<8x128xf32>
    %c0_165 = arith.constant 0 : index
    %c0_166 = arith.constant 0 : index
    %c0_167 = arith.constant 0 : index
    %369 = vector.load %arg19[%c0_165, %c0_166, %c0_167] : memref<1x8x128xf32, #tpu.memory_space<vmem>>, vector<1x8x128xf32>
    %370 = vector.shape_cast %369 : vector<1x8x128xf32> to vector<8x128xf32>
    %371 = vector.shape_cast %368 : vector<8x128xf32> to vector<1x8x128xf32>
    tpu.vector_store %arg19[%c0_165, %c0_166, %c0_167], %371 {strides = array<i32>} : memref<1x8x128xf32, #tpu.memory_space<vmem>>, vector<1x8x128xf32>,
    return
  }
  func.func @transform_0(%arg0: i32) -> (i32, i32, i32) {
    %c0_i32 = arith.constant 0 : i32
    %c0_i32_0 = arith.constant 0 : i32
    %c0_i32_1 = arith.constant 0 : i32
    return %arg0, %c0_i32, %c0_i32_0 : i32, i32, i32
  }
  func.func @transform_1(%arg0: i32) -> (i32, i32, i32) {
    %c0_i32 = arith.constant 0 : i32
    %c0_i32_0 = arith.constant 0 : i32
    %c0_i32_1 = arith.constant 0 : i32
    return %arg0, %c0_i32, %c0_i32_0 : i32, i32, i32
  }
  func.func @transform_2(%arg0: i32) -> (i32, i32) {
    %c0_i32 = arith.constant 0 : i32
    %c0_i32_0 = arith.constant 0 : i32
    %c0_i32_1 = arith.constant 0 : i32
    return %c0_i32, %c0_i32_0 : i32, i32
  }
  func.func @transform_3(%arg0: i32) -> (i32, i32) {
    %c0_i32 = arith.constant 0 : i32
    %c0_i32_0 = arith.constant 0 : i32
    %c0_i32_1 = arith.constant 0 : i32
    return %c0_i32, %c0_i32_0 : i32, i32
  }
  func.func @transform_4(%arg0: i32) -> (i32, i32, i32) {
    %c0_i32 = arith.constant 0 : i32
    %c0_i32_0 = arith.constant 0 : i32
    %c0_i32_1 = arith.constant 0 : i32
    %c0_i32_2 = arith.constant 0 : i32
    return %c0_i32, %c0_i32_0, %c0_i32_1 : i32, i32, i32
  }
  func.func @transform_5(%arg0: i32) -> (i32, i32, i32) {
    %c0_i32 = arith.constant 0 : i32
    %c0_i32_0 = arith.constant 0 : i32
    %c0_i32_1 = arith.constant 0 : i32
    %c0_i32_2 = arith.constant 0 : i32
    return %c0_i32, %c0_i32_0, %c0_i32_1 : i32, i32, i32
  }
  func.func @transform_6(%arg0: i32) -> (i32, i32, i32) {
    %c0_i32 = arith.constant 0 : i32
    %c0_i32_0 = arith.constant 0 : i32
    %c0_i32_1 = arith.constant 0 : i32
    %c0_i32_2 = arith.constant 0 : i32
    return %c0_i32, %c0_i32_0, %c0_i32_1 : i32, i32, i32
  }
  func.func @transform_7(%arg0: i32) -> (i32, i32, i32) {
    %c0_i32 = arith.constant 0 : i32
    %c0_i32_0 = arith.constant 0 : i32
    %c0_i32_1 = arith.constant 0 : i32
    %c0_i32_2 = arith.constant 0 : i32
    return %c0_i32, %c0_i32_0, %c0_i32_1 : i32, i32, i32
  }
  func.func @transform_8(%arg0: i32) -> (i32, i32, i32) {
    %c0_i32 = arith.constant 0 : i32
    %c0_i32_0 = arith.constant 0 : i32
    %c0_i32_1 = arith.constant 0 : i32
    %c0_i32_2 = arith.constant 0 : i32
    return %c0_i32, %c0_i32_0, %c0_i32_1 : i32, i32, i32
  }
  func.func @transform_9(%arg0: i32) -> (i32, i32, i32) {
    %c0_i32 = arith.constant 0 : i32
    %c0_i32_0 = arith.constant 0 : i32
    %c0_i32_1 = arith.constant 0 : i32
    %c0_i32_2 = arith.constant 0 : i32
    return %c0_i32, %c0_i32_0, %c0_i32_1 : i32, i32, i32
  }
  func.func @transform_10(%arg0: i32) -> (i32, i32, i32) {
    %c0_i32 = arith.constant 0 : i32
    %c0_i32_0 = arith.constant 0 : i32
    %c0_i32_1 = arith.constant 0 : i32
    %c0_i32_2 = arith.constant 0 : i32
    return %c0_i32, %c0_i32_0, %c0_i32_1 : i32, i32, i32
  }
  func.func @transform_11(%arg0: i32) -> (i32, i32, i32) {
    %c0_i32 = arith.constant 0 : i32
    %c0_i32_0 = arith.constant 0 : i32
    %c0_i32_1 = arith.constant 0 : i32
    %c0_i32_2 = arith.constant 0 : i32
    return %c0_i32, %c0_i32_0, %c0_i32_1 : i32, i32, i32
  }
  func.func @transform_12(%arg0: i32) -> (i32, i32, i32) {
    %c0_i32 = arith.constant 0 : i32
    %c0_i32_0 = arith.constant 0 : i32
    %c0_i32_1 = arith.constant 0 : i32
    %c0_i32_2 = arith.constant 0 : i32
    return %c0_i32, %c0_i32_0, %c0_i32_1 : i32, i32, i32
  }
  func.func @transform_13(%arg0: i32) -> (i32, i32, i32) {
    %c0_i32 = arith.constant 0 : i32
    %c0_i32_0 = arith.constant 0 : i32
    %c0_i32_1 = arith.constant 0 : i32
    %c0_i32_2 = arith.constant 0 : i32
    return %c0_i32, %c0_i32_0, %c0_i32_1 : i32, i32, i32
  }
  func.func @transform_14(%arg0: i32) -> (i32, i32, i32) {
    %c0_i32 = arith.constant 0 : i32
    %c0_i32_0 = arith.constant 0 : i32
    %c0_i32_1 = arith.constant 0 : i32
    %c0_i32_2 = arith.constant 0 : i32
    return %c0_i32, %c0_i32_0, %c0_i32_1 : i32, i32, i32
  }
  func.func @transform_15(%arg0: i32) -> (i32, i32, i32) {
    %c0_i32 = arith.constant 0 : i32
    %c0_i32_0 = arith.constant 0 : i32
    %c0_i32_1 = arith.constant 0 : i32
    %c0_i32_2 = arith.constant 0 : i32
    return %c0_i32, %c0_i32_0, %c0_i32_1 : i32, i32, i32
  }
  func.func @transform_16(%arg0: i32) -> (i32, i32) {
    %c0_i32 = arith.constant 0 : i32
    %c0_i32_0 = arith.constant 0 : i32
    %c0_i32_1 = arith.constant 0 : i32
    return %c0_i32, %c0_i32_0 : i32, i32
  }
  func.func @transform_17(%arg0: i32) -> (i32, i32) {
    %c0_i32 = arith.constant 0 : i32
    %c0_i32_0 = arith.constant 0 : i32
    %c0_i32_1 = arith.constant 0 : i32
    return %c0_i32, %c0_i32_0 : i32, i32
  }
  func.func @transform_18(%arg0: i32) -> (i32, i32, i32) {
    %c0_i32 = arith.constant 0 : i32
    %c0_i32_0 = arith.constant 0 : i32
    %c0_i32_1 = arith.constant 0 : i32
    return %arg0, %c0_i32, %c0_i32_0 : i32, i32, i32
  }
}

</mosaic_0001>

<bundles_post_ra>
// kernel: title_classifier_forward.1
= control target key start
LH: loop header
LB: loop body
LE: loop exit
PB: predicated region body
PF: predicated region fallthrough
CT: control target
= control target key end

     0   :  { %s3521_s27 = smov 0   ;;  %s3990_s0 = inlined_call_operand.vmem [shape: f32[2,1,8], index: 0, kind: input, shape index: {}]   ;;  %s3991_s1 = inlined_call_operand.vmem [shape: f32[2,8,32], index: 1, kind: input, shape index: {}]   ;;  %s3992_s2 = inlined_call_operand.vmem [shape: f32[1,32], index: 2, kind: input, shape index: {}]   ;;  %s3993_s3 = inlined_call_operand.vmem [shape: f32[1,32], index: 3, kind: input, shape index: {}]   ;;  %s3994_s4 = inlined_call_operand.vmem [shape: f32[2,32,96], index: 4, kind: input, shape index: {}]   ;;  %s3995_s5 = inlined_call_operand.vmem [shape: f32[2,1,96], index: 5, kind: input, shape index: {}]   ;;  %s3996_s6 = inlined_call_operand.vmem [shape: f32[2,32,32], index: 6, kind: input, shape index: {}]   ;;  %s3997_s7 = inlined_call_operand.vmem [shape: f32[2,1,32], index: 7, kind: input, shape index: {}]   ;;  %s3998_s8 = inlined_call_operand.vmem [shape: f32[2,1,32], index: 8, kind: input, shape index: {}]   ;;  %s3999_s9 = inlined_call_operand.vmem [shape: f32[2,1,32], index: 9, kind: input, shape index: {}]   ;;  %s4000_s10 = inlined_call_operand.vmem [shape: f32[2,32,64], index: 10, kind: input, shape index: {}]   ;;  %s4001_s11 = inlined_call_operand.vmem [shape: f32[2,1,64], index: 11, kind: input, shape index: {}]   ;;  %s4002_s12 = inlined_call_operand.vmem [shape: f32[2,64,32], index: 12, kind: input, shape index: {}]   ;;  %s4003_s13 = inlined_call_operand.vmem [shape: f32[2,1,32], index: 13, kind: input, shape index: {}]   ;;  %s4004_s14 = inlined_call_operand.vmem [shape: f32[2,1,32], index: 14, kind: input, shape index: {}]   ;;  %s4005_s15 = inlined_call_operand.vmem [shape: f32[2,1,32], index: 15, kind: input, shape index: {}]   ;;  %s4006_s16 = inlined_call_operand.vmem [shape: f32[32,128], index: 16, kind: input, shape index: {}]   ;;  %s4007_s17 = inlined_call_operand.vmem [shape: f32[1,128], index: 17, kind: input, shape index: {}]   ;;  %s4008_s18 = inlined_call_operand.vmem [shape: f32[2,8,128], index: 18, kind: output, shape index: {}]  }
   0x1   :  { %4019 = sst [smem:[#allocation2_spill]] %s3990_s0 }
   0x2   :  { %4020 = sst [smem:[#allocation3_spill]] %s3991_s1 }
   0x3   :  { %4021 = sst [smem:[#allocation4_spill]] %s3992_s2 }
   0x4 LB: > { %s2963_s28 = sadd.s32 4294967295, %s3408_s27   ;;  %p2967_p0 = scmp.ge.s32.totalorder %s3408_s27, 1  ;;  %s3408_s27 = sphi %s3521_s27, %s28_s27  }
   0x5   : > { %p519_p1 = scmp.lt.s32.totalorder %s3408_s27, 3 }
   0x7   : > { %p520_p2 = pnand %p2967_p0, %p519_p1 }
   0x8   : > { %p574_p3 = scmp.lt.s32.totalorder (!%p520_p2), %s2963_s28, 1  ;;  %s4022_s19 = sld [smem:[#allocation3_spill]] (!%p520_p2) }
   0x9   : > { %523 = sbr.rel (%p520_p2) target bundleno = 5767 (0x1687), region = 92  ;;  %s4013_s2 = smov (!%p520_p2), 64  }
   0xa   : > { %s3413_s23 = smov (!%p520_p2), 96   ;;  %s3414_s24 = smov (!%p520_p2), 88  }
   0xb   : > { %s4024_s30 = sld [smem:[#allocation2_spill]] (!%p520_p2)  ;;  %s3417_s20 = smov (!%p520_p2), 112  }
   0xc   : > { %s4014_s21 = smov (!%p520_p2), 72   ;;  %s4018_s22 = smov (!%p520_p2), 104  }
   0xd   : > { %s4012_s25 = smov (!%p520_p2), 48   ;;  %s4010_s26 = smov (!%p520_p2), 56  }
   0xe   : > { %s4036_s28 = smov (!%p574_p3, %s2963_s28), 1  ;;  %vm588_vm0 = vcmask 261120   ;;  %v623_v7 = vld [vmem:[%s3994_s4 + $0x18] sm:$0xff]  ;;  %v3410_v8 = vmov 0.0   ;;  %v622_v9 = vld [vmem:[%s3994_s4 + $0x10] sm:$0xff]  ;;  %vm3411_vm1 = vmmov 0   ;;  %v784_v27 = vlaneseq }
   0xf   : > { %s4009_s29 = sshll.u32 %s4036_s28, 3  ;;  %3137 = vmatprep.subr.mxu0 %v3410_v8  ;;  %3145 = vmatprep.mubr.msk.f32.mxu0 %vm3411_vm1, %v3410_v8  ;;  %v621_v10 = vld [vmem:[%s3994_s4 + $0x8] sm:$0xff]  ;;  %v620_v11 = vld [vmem:[%s3994_s4] sm:$0xff]  ;;  %vm707_vm2 = vcmask 64512   ;;  %vm1391_vm3 = vcmask 130048   ;;  %vm1393_vm4 = vcmask 195584  }
  0x10   : > { %s580_s1 = scalar_lea.vmem %s4022_s19, %s4009_s29  ;;  %3138 = vmatpush3.msra.mxu0 %v623_v7  ;;  %3148 = vmatprep.subr.mxu1 %v3410_v8  ;;  %s4023_s19 = sld [smem:[#allocation4_spill]]  ;;  %v2971_v18 = vld [vmem:[%s3993_s3] ss:$0 sm:$0xff]  ;;  %v785_v29 = vshrl.u32 %v784_v27, 7  ;;  %vm1613_vm5 = vcmask 523264  }
  0x11   : > { %v585_v0 = vld [vmem:[%s580_s1] sm:$0xff]  ;;  %3139 = vmatprep.subr.mxu0 %v3410_v8  ;;  %3150 = vmatprep.mubr.msk.f32.mxu1 %vm3411_vm1, %v3410_v8  ;;  %s576_s0 = scalar_lea.vmem %s4024_s30, %s4036_s28  ;;  %s3416_s1 = smov 120  }
  0x12   : > { %v589_v1 = vsel %vm588_vm0, %v585_v0, 0.0  ;;  %3140 = vmatpush3.msra.mxu0 %v622_v9  ;;  %v2972_v21 = vld [vmem:[%s3995_s5] ss:$0 sm:$0xff]  ;;  %v786_v31 = vsub.s32 0, %v785_v29  ;;  %s4011_s30 = smov 40  }
  0x13   : > { %590 = vadd.xlane.f32.xlu0 %v589_v1  ;;  %3141 = vmatprep.subr.mxu0 %v3410_v8  ;;  %v617_v28 = vld [vmem:[%s576_s0] sm:$0x1] }
  0x14   : > { %3142 = vmatpush3.msra.mxu0 %v621_v10  ;;  %v618_v30 = vsub.f32 1.0, %v617_v28 }
  0x15   : > { %3143 = vmatprep.subr.mxu0 %v3410_v8 }
  0x16   : > { %3144 = vmatpush3.msra.mxu0 %v620_v11  ;;  %v2970_v16 = vld [vmem:[%s4023_s19] ss:$0 sm:$0xff]  ;;  %v619_v32 = vmul.f32 -10000.0, %v618_v30  ;;  %s3415_s19 = smov 80  }
  0x17   : > { %3168 = vmatprep.subr.mxu0 %v3410_v8 }
  0x18   : > { %v3595_v33 = vrot.slane %v619_v32, %v786_v31 }
  0x9c   : > { %v591_v2 = vpop.xlane.xlu0 %590 }
  0x9d   : > { %v593_v3 = vmul.f32 0.03125, %v591_v2 }
  0x9f   : > { %v594_v4 = vsub.f32 %v585_v0, %v593_v3 }
  0xa1   : > { %v595_v5 = vmul.f32 %v594_v4, %v594_v4 }
  0xa3   : > { %v596_v6 = vsel %vm588_vm0, %v595_v5, 0.0 }
  0xa4   : > { %597 = vadd.xlane.f32.xlu0 %v596_v6 }
 0x12d   : > { %v598_v12 = vpop.xlane.xlu0 %597 }
 0x12e   : > { %v599_v13 = vmul.f32 0.03125, %v598_v12 }
 0x130   : > { %v600_v14 = vadd.f32 1e-12, %v599_v13 }
 0x132   : > { %3356 = vrsqrt.f32 %v600_v14 }
 0x13f   : > { %v3357_v15 = vpop.eup %3356 }
 0x140   : > { %v602_v17 = vmul.f32 %v3357_v15, %v594_v4 }
 0x142   : > { %v609_v19 = vmul.f32 %v2970_v16, %v602_v17 }
 0x144   : > { %v3567_v20 = vadd.f32 %v2971_v18, %v609_v19 }
 0x146   : > { %3146 = vmatmul.mubr.msk.f32.vlgmr.msra.gmra.mxu0 %vm588_vm0, %v3567_v20 }
 0x147   : > { %3170 = vmatprep.mubr.msk.f32.mxu0 %vm3411_vm1, %v3410_v8 }
 0x206   : > { %v700_v22 = vpop.f32.mrf.mxu0 }
 0x207   : > { %v3576_v23 = vadd.f32 %v2972_v21, %v700_v22 }
 0x208   : > { %v3147_v24 = vpop.f32.mrf.mxu0 }
 0x209   : > { %801 = vrot.lane.b32.xlu0 %v3576_v23, %s4013_s2  ;;  %705 = vrot.lane.b32.xlu1 %v3576_v23, %s3413_s23  ;;  %s4016_s2 = smov 16  }
 0x20d   : > { %879 = vrot.lane.b32.xlu0 %v3576_v23, %s3414_s24 }
 0x27b   : > { %v706_v25 = vpop.permute.xlu1 %705  ;;  %v802_v26 = vpop.permute.xlu0 %801 }
 0x27c   : > { %3149 = vmatpush3.xpose.msk.msra.mxu1 %vm707_vm2, %v706_v25 }
 0x27d   : > { %3153 = vmatprep.subr.mxu1 %v3410_v8 }
 0x27f   : > { %3151 = vmatmul.mubr.msk.f32.vlgmr.msra.gmra.mxu1 %vm707_vm2, %v3576_v23  ;;  %v880_v45 = vpop.permute.xlu0 %879 }
 0x280   : > { %3154 = vmatpush3.msra.mxu1 %v802_v26  ;;  %3155 = vmatprep.mubr.msk.f32.mxu1 %vm3411_vm1, %v3410_v8 }
 0x281   : > { %3158 = vmatprep.subr.mxu1 %v3410_v8 }
 0x33f   : > { %v778_v34 = vpop.f32.mrf.mxu1 }
 0x340   : > { %v782_v35 = vmul.f32 0.35355338, %v778_v34 }
 0x341   : > { %v3152_v36 = vpop.f32.mrf.mxu1 }
 0x342   : > { %v789_v37 = vadd.f32 %v3595_v33, %v782_v35  ;;  %v1398_v36 = vld [vmem:[%s3996_s6 + $0x18] sm:$0xff] }
 0x344   : > { %v790_v38 = vsel %vm707_vm2, %v789_v37, -inf }
 0x345   : > { %791 = vmax.xlane.f32.xlu1 %v790_v38  ;;  %v1396_v38 = vld [vmem:[%s3996_s6 + $0x8] sm:$0xff] }
 0x356   : > { %1046 = vrot.lane.b32.xlu1 %v3576_v23, %s3415_s19 }
 0x3ce   : > { %v792_v39 = vpop.xlane.xlu1 %791 }
 0x3cf   : > { %v793_v40 = vsub.f32 %v789_v37, %v792_v39  ;;  %v1397_v37 = vld [vmem:[%s3996_s6 + $0x10] sm:$0xff]  ;;  %v1395_v39 = vld [vmem:[%s3996_s6] sm:$0xff] }
 0x3d1   : > { %v794_v41 = vmul.f32 1.442695, %v793_v40 }
 0x3d2   : > { %v1047_v42 = vpop.permute.xlu1 %1046 }
 0x3d3   : > { %3358 = vpow2.f32 %v794_v41  ;;  %3169 = vmatpush3.xpose.msk.msra.mxu0 %vm707_vm2, %v1047_v42 }
 0x3d4   : > { %3178 = vmatprep.subr.mxu0 %v3410_v8 }
 0x3e0   : > { %v3359_v43 = vpop.eup %3358 }
 0x3e1   : > { %v796_v44 = vsel %vm707_vm2, %v3359_v43, 0.0 }
 0x3e2   : > { %797 = vadd.xlane.f32.xlu0 %v796_v44 }
 0x3f8   : > { %877 = vrot.lane.b32.xlu0 %v3576_v23, %s3416_s1 }
 0x3fc   : > { %1044 = vrot.lane.b32.xlu0 %v3576_v23, %s3417_s20 }
 0x400   : > { %1213 = vrot.lane.b32.xlu0 %v3576_v23, %s4014_s21  ;;  %s4025_s21 = smov 104  }
 0x404   : > { %1211 = vrot.lane.b32.xlu0 %v3576_v23, %s4018_s22 }
 0x46b   : > { %v798_v46 = vpop.xlane.xlu0 %797 }
 0x46c   : > { %3360 = vrcp.f32 %v798_v46 }
 0x46f   : > { %v878_v47 = vpop.permute.xlu0 %877 }
 0x473   : > { %v1045_v48 = vpop.permute.xlu0 %1044 }
 0x474   : > { %3171 = vmatmul.mubr.msk.f32.vlgmr.msra.gmra.mxu0 %vm707_vm2, %v1045_v48 }
 0x475   : > { %3180 = vmatprep.mubr.msk.f32.mxu0 %vm3411_vm1, %v3410_v8 }
 0x477   : > { %v1214_v49 = vpop.permute.xlu0 %1213 }
 0x478   : > { %3179 = vmatpush3.xpose.msk.msra.mxu0 %vm707_vm2, %v1214_v49 }
 0x479   : > { %v3361_v50 = vpop.eup %3360  ;;  %3188 = vmatprep.subr.mxu0 %v3410_v8 }
 0x47a   : > { %v800_v51 = vmul.f32 %v3361_v50, %v3359_v43 }
 0x47b   : > { %v1212_v52 = vpop.permute.xlu0 %1211 }
 0x47c   : > { %3156 = vmatmul.mubr.msk.f32.vlgmr.msra.gmra.mxu1 %vm707_vm2, %v800_v51  ;;  %3181 = vmatmul.mubr.msk.f32.vlgmr.msra.gmra.mxu0 %vm707_vm2, %v1212_v52  ;;  %v2986_v52 = vld [vmem:[%s3997_s7] ss:$0 sm:$0xff] }
 0x47d   : > { %3159 = vmatpush3.xpose.msk.msra.mxu1 %vm707_vm2, %v880_v45  ;;  %3160 = vmatprep.mubr.msk.f32.mxu1 %vm3411_vm1, %v3410_v8 }
 0x47e   : > { %3163 = vmatprep.subr.mxu1 %v3410_v8  ;;  %3196 = vmatprep.mubr.msk.f32.mxu0 %vm3411_vm1, %v3410_v8 }
 0x47f   : > { %3189 = vmatpush3.msra.mxu0 %v1398_v36 }
 0x480   : > { %3161 = vmatmul.mubr.msk.f32.vlgmr.msra.gmra.mxu1 %vm707_vm2, %v878_v47  ;;  %3190 = vmatprep.subr.mxu0 %v3410_v8 }
 0x481   : > { %3165 = vmatprep.mubr.msk.f32.mxu1 %vm3411_vm1, %v3410_v8  ;;  %3191 = vmatpush3.msra.mxu0 %v1397_v37 }
 0x482   : > { %3192 = vmatprep.subr.mxu0 %v3410_v8 }
 0x483   : > { %3193 = vmatpush3.msra.mxu0 %v1396_v38 }
 0x484   : > { %3194 = vmatprep.subr.mxu0 %v3410_v8 }
 0x485   : > { %3195 = vmatpush3.msra.mxu0 %v1395_v39 }
 0x486   : > { %3210 = vmatprep.subr.mxu0 %v3410_v8 }
 0x534   : > { %v1118_v53 = vpop.f32.mrf.mxu0 }
 0x535   : > { %v1122_v54 = vmul.f32 0.35355338, %v1118_v53 }
 0x536   : > { %v3172_v55 = vpop.f32.mrf.mxu0 }
 0x537   : > { %v1123_v56 = vadd.f32 %v1122_v54, %v3595_v33 }
 0x539   : > { %v1124_v57 = vsel %vm707_vm2, %v1123_v56, -inf }
 0x53a   : > { %1125 = vmax.xlane.f32.xlu1 %v1124_v57 }
 0x53c   : > { %v3630_v58 = vpop.f32.mrf.mxu1  ;;  %v1285_v59 = vpop.f32.mrf.mxu0 }
 0x53d   : > { %v1289_v63 = vmul.f32 0.35355338, %v1285_v59 }
 0x53e   : > { %v3157_v60 = vpop.f32.mrf.mxu1  ;;  %v3182_v61 = vpop.f32.mrf.mxu0 }
 0x53f   : > { %v1290_v4 = vadd.f32 %v1289_v63, %v3595_v33  ;;  %v1512_v63 = vld [vmem:[%s4000_s10 + $0x18] sm:$0xff] }
 0x540   : > { %v951_v62 = vpop.f32.mrf.mxu1 }
 0x541   : > { %v955_v0 = vmul.f32 0.35355338, %v951_v62  ;;  %v1291_v5 = vsel %vm707_vm2, %v1290_v4, -inf }
 0x542   : > { %v3162_v1 = vpop.f32.mrf.mxu1 }
 0x543   : > { %v956_v2 = vadd.f32 %v955_v0, %v3595_v33  ;;  %v1511_v0 = vld [vmem:[%s4000_s10 + $0x10] sm:$0xff]  ;;  %v1509_v1 = vld [vmem:[%s4000_s10] sm:$0xff] }
 0x545   : > { %v957_v3 = vsel %vm707_vm2, %v956_v2, -inf }
 0x546   : > { %958 = vmax.xlane.f32.xlu0 %v957_v3 }
 0x54a   : > { %1292 = vmax.xlane.f32.xlu0 %v1291_v5 }
 0x5c3   : > { %v1126_v6 = vpop.xlane.xlu1 %1125 }
 0x5c4   : > { %v1127_v7 = vsub.f32 %v1123_v56, %v1126_v6  ;;  %v2988_v6 = vld [vmem:[%s3998_s8] ss:$0 sm:$0xff] }
 0x5c6   : > { %v1128_v9 = vmul.f32 1.442695, %v1127_v7 }
 0x5c8   : > { %3362 = vpow2.f32 %v1128_v9  ;;  %v2989_v9 = vld [vmem:[%s3999_s9] ss:$0 sm:$0xff] }
 0x5cf   : > { %v959_v10 = vpop.xlane.xlu0 %958 }
 0x5d0   : > { %v960_v11 = vsub.f32 %v956_v2, %v959_v10 }
 0x5d2   : > { %v961_v12 = vmul.f32 1.442695, %v960_v11 }
 0x5d3   : > { %v1293_v13 = vpop.xlane.xlu0 %1292 }
 0x5d4   : > { %3364 = vpow2.f32 %v961_v12  ;;  %v1294_v14 = vsub.f32 %v1290_v4, %v1293_v13  ;;  %v1605_v12 = vld [vmem:[%s4002_s12 + $0x38] sm:$0xff]  ;;  %v1604_v13 = vld [vmem:[%s4002_s12 + $0x30] sm:$0xff] }
 0x5d5   : > { %v3363_v15 = vpop.eup %3362 }
 0x5d6   : > { %v1295_v16 = vmul.f32 1.442695, %v1294_v14  ;;  %v1130_v17 = vsel %vm707_vm2, %v3363_v15, 0.0  ;;  %v1603_v14 = vld [vmem:[%s4002_s12 + $0x28] sm:$0xff] }
 0x5d7   : > { %1131 = vadd.xlane.f32.xlu0 %v1130_v17  ;;  %v1600_v17 = vld [vmem:[%s4002_s12 + $0x10] sm:$0xff] }
 0x5d8   : > { %3366 = vpow2.f32 %v1295_v16  ;;  %v1601_v16 = vld [vmem:[%s4002_s12 + $0x18] sm:$0xff] }
 0x5e1   : > { %v3365_v18 = vpop.eup %3364 }
 0x5e2   : > { %v963_v19 = vsel %vm707_vm2, %v3365_v18, 0.0 }
 0x5e3   : > { %964 = vadd.xlane.f32.xlu0 %v963_v19  ;;  %v1598_v19 = vld [vmem:[%s4002_s12] sm:$0xff] }
 0x5e5   : > { %v3367_v21 = vpop.eup %3366 }
 0x5e6   : > { %v1297_v22 = vsel %vm707_vm2, %v3367_v21, 0.0 }
 0x5e7   : > { %1298 = vadd.xlane.f32.xlu1 %v1297_v22 }
 0x5f8   : > { %1135 = vrot.lane.b32.xlu1 %v3576_v23, %s4012_s25  ;;  %s4015_s25 = smov 24  }
 0x5f9   : > { %968 = vrot.lane.b32.xlu0 %v3576_v23, %s4010_s26  ;;  %s4017_s26 = smov 8  }
 0x5fc   : > { %1302 = vrot.lane.b32.xlu1 %v3576_v23, %s4011_s30  ;;  %s4026_s30 = smov 72  }
 0x660   : > { %v1132_v24 = vpop.xlane.xlu0 %1131 }
 0x66c   : > { %v965_v25 = vpop.xlane.xlu0 %964 }
 0x66d   : > { %3368 = vrcp.f32 %v965_v25 }
 0x66e   : > { %3370 = vrcp.f32 %v1132_v24 }
 0x670   : > { %v1299_v26 = vpop.xlane.xlu1 %1298  ;;  %v969_v27 = vpop.permute.xlu0 %968 }
 0x671   : > { %3164 = vmatpush3.msra.mxu1 %v969_v27  ;;  %3372 = vrcp.f32 %v1299_v26 }
 0x672   : > { %3173 = vmatprep.subr.mxu1 %v3410_v8 }
 0x674   : > { %v1136_v29 = vpop.permute.xlu1 %1135 }
 0x678   : > { %v1303_v34 = vpop.permute.xlu1 %1302 }
 0x67a   : > { %v3369_v28 = vpop.eup %3368 }
 0x67b   : > { %v967_v30 = vmul.f32 %v3369_v28, %v3365_v18  ;;  %v3371_v31 = vpop.eup %3370  ;;  %v1599_v18 = vld [vmem:[%s4002_s12 + $0x8] sm:$0xff] }
 0x67c   : > { %v1134_v23 = vmul.f32 %v3371_v31, %v3363_v15  ;;  %v1602_v15 = vld [vmem:[%s4002_s12 + $0x20] sm:$0xff] }
 0x67d   : > { %3166 = vmatmul.mubr.msk.f32.vlgmr.msra.gmra.mxu1 %vm707_vm2, %v967_v30  ;;  %v2992_v31 = vld [vmem:[%s4003_s13] ss:$0 sm:$0xff] }
 0x67e   : > { %3174 = vmatpush3.msra.mxu1 %v1136_v29  ;;  %3175 = vmatprep.mubr.msk.f32.mxu1 %vm3411_vm1, %v3410_v8  ;;  %v3373_v32 = vpop.eup %3372 }
 0x67f   : > { %3183 = vmatprep.subr.mxu1 %v3410_v8  ;;  %v1301_v35 = vmul.f32 %v3373_v32, %v3367_v21  ;;  %v2990_v21 = vld [vmem:[%s4001_s11] ss:$0 sm:$0xff] }
 0x681   : > { %3176 = vmatmul.mubr.msk.f32.vlgmr.msra.gmra.mxu1 %vm707_vm2, %v1134_v23 }
 0x682   : > { %3184 = vmatpush3.msra.mxu1 %v1303_v34  ;;  %3185 = vmatprep.mubr.msk.f32.mxu1 %vm3411_vm1, %v3410_v8 }
 0x683   : > { %3199 = vmatprep.subr.mxu1 %v3410_v8 }
 0x685   : > { %3186 = vmatmul.mubr.msk.f32.vlgmr.msra.gmra.mxu1 %vm707_vm2, %v1301_v35 }
 0x686   : > { %3207 = vmatprep.mubr.msk.f32.mxu1 %vm3411_vm1, %v3410_v8  ;;  %3200 = vmatpush3.msra.mxu1 %v1512_v63 }
 0x687   : > { %3201 = vmatprep.subr.mxu1 %v3410_v8 }
 0x688   : > { %3202 = vmatpush3.msra.mxu1 %v1511_v0 }
 0x689   : > { %3203 = vmatprep.subr.mxu1 %v3410_v8 }
 0x73d   : > { %v1040_v40 = vpop.f32.mrf.mxu1 }
 0x73e   : > { %1379 = vrot.lane.b32.xlu1 %v1040_v40, %s4017_s26 }
 0x73f   : > { %v3167_v41 = vpop.f32.mrf.mxu1 }
 0x741   : > { %v1207_v42 = vpop.f32.mrf.mxu1 }
 0x742   : > { %1383 = vrot.lane.b32.xlu0 %v1207_v42, %s4016_s2  ;;  %v2999_v42 = vld [vmem:[%s3994_s4 + $0x38] sm:$0xff] }
 0x743   : > { %v3177_v43 = vpop.f32.mrf.mxu1 }
 0x744   : > { %v2998_v43 = vld [vmem:[%s3994_s4 + $0x30] sm:$0xff] }
 0x745   : > { %v1374_v44 = vpop.f32.mrf.mxu1 }
 0x746   : > { %1387 = vrot.lane.b32.xlu1 %v1374_v44, %s4015_s25  ;;  %v2997_v44 = vld [vmem:[%s3994_s4 + $0x28] sm:$0xff] }
 0x747   : > { %v3187_v45 = vpop.f32.mrf.mxu1 }
 0x748   : > { %v2996_v45 = vld [vmem:[%s3994_s4 + $0x20] sm:$0xff] }
 0x7b0   : > { %v1380_v46 = vpop.permute.xlu1 %1379 }
 0x7b1   : > { %v1390_v48 = vsel %vm707_vm2, %v3630_v58, %v1380_v46 }
 0x7b4   : > { %v1384_v47 = vpop.permute.xlu0 %1383 }
 0x7b5   : > { %v1392_v49 = vsel %vm1391_vm3, %v1390_v48, %v1384_v47 }
 0x7b8   : > { %v1388_v50 = vpop.permute.xlu1 %1387 }
 0x7b9   : > { %v1394_v51 = vsel %vm1393_vm4, %v1392_v49, %v1388_v50  ;;  %v2994_v50 = vld [vmem:[%s4004_s14] ss:$0 sm:$0xff] }
 0x7ba   : > { %3197 = vmatmul.mubr.msk.f32.vlgmr.msra.gmra.mxu0 %vm588_vm0, %v1394_v51 }
 0x7bb   : > { %3226 = vmatprep.mubr.msk.f32.mxu0 %vm3411_vm1, %v3410_v8  ;;  %3211 = vmatpush3.msra.mxu0 %v1605_v12 }
 0x7bc   : > { %3212 = vmatprep.subr.mxu0 %v3410_v8 }
 0x7bd   : > { %3213 = vmatpush3.msra.mxu0 %v1604_v13 }
 0x7be   : > { %3214 = vmatprep.subr.mxu0 %v3410_v8 }
 0x7bf   : > { %3215 = vmatpush3.msra.mxu0 %v1603_v14 }
 0x7c0   : > { %3216 = vmatprep.subr.mxu0 %v3410_v8 }
 0x7c1   : > { %3217 = vmatpush3.msra.mxu0 %v1602_v15 }
 0x7c2   : > { %3218 = vmatprep.subr.mxu0 %v3410_v8 }
 0x7c3   : > { %3219 = vmatpush3.msra.mxu0 %v1601_v16 }
 0x7c4   : > { %3220 = vmatprep.subr.mxu0 %v3410_v8 }
 0x7c5   : > { %3221 = vmatpush3.msra.mxu0 %v1600_v17 }
 0x7c6   : > { %3222 = vmatprep.subr.mxu0 %v3410_v8 }
 0x7c7   : > { %3223 = vmatpush3.msra.mxu0 %v1599_v18 }
 0x7c8   : > { %3224 = vmatprep.subr.mxu0 %v3410_v8 }
 0x7c9   : > { %3225 = vmatpush3.msra.mxu0 %v1598_v19 }
 0x7ca   : > { %3250 = vmatprep.subr.mxu0 %v3410_v8 }
 0x87a   : > { %v1475_v53 = vpop.f32.mrf.mxu0 }
 0x87b   : > { %v1476_v54 = vadd.f32 %v2986_v52, %v1475_v53  ;;  %v2995_v52 = vld [vmem:[%s4005_s15] ss:$0 sm:$0xff] }
 0x87c   : > { %v3198_v55 = vpop.f32.mrf.mxu0 }
 0x87d   : > { %v1479_v56 = vadd.f32 %v1476_v54, %v3567_v20  ;;  %v1510_v20 = vld [vmem:[%s4000_s10 + $0x8] sm:$0xff]  ;;  %v3001_v55 = vld [vmem:[%s3995_s5 + $0x1] ss:$0 sm:$0xff] }
 0x87e   : > { %3204 = vmatpush3.msra.mxu1 %v1510_v20 }
 0x87f   : > { %v1482_v57 = vsel %vm588_vm0, %v1479_v56, 0.0  ;;  %3205 = vmatprep.subr.mxu1 %v3410_v8 }
 0x880   : > { %1483 = vadd.xlane.f32.xlu0 %v1482_v57  ;;  %3206 = vmatpush3.msra.mxu1 %v1509_v1 }
 0x881   : > { %3229 = vmatprep.subr.mxu1 %v3410_v8 }
 0x909   : > { %v1484_v58 = vpop.xlane.xlu0 %1483 }
 0x90a   : > { %v1485_v59 = vmul.f32 0.03125, %v1484_v58 }
 0x90c   : > { %v1486_v60 = vsub.f32 %v1479_v56, %v1485_v59 }
 0x90e   : > { %v1487_v61 = vmul.f32 %v1486_v60, %v1486_v60 }
 0x910   : > { %v1488_v62 = vsel %vm588_vm0, %v1487_v61, 0.0 }
 0x911   : > { %1489 = vadd.xlane.f32.xlu1 %v1488_v62 }
 0x99a   : > { %v1490_v2 = vpop.xlane.xlu1 %1489 }
 0x99b   : > { %v1491_v3 = vmul.f32 0.03125, %v1490_v2 }
 0x99d   : > { %v1492_v4 = vadd.f32 1e-12, %v1491_v3 }
 0x99f   : > { %3374 = vrsqrt.f32 %v1492_v4 }
 0x9ac   : > { %v3375_v5 = vpop.eup %3374 }
 0x9ad   : > { %v1494_v7 = vmul.f32 %v3375_v5, %v1486_v60 }
 0x9af   : > { %v1501_v10 = vmul.f32 %v2988_v6, %v1494_v7 }
 0x9b1   : > { %v1508_v11 = vadd.f32 %v2989_v9, %v1501_v10 }
 0x9b3   : > { %3208 = vmatmul.mubr.msk.f32.vlgmr.msra.gmra.mxu1 %vm588_vm0, %v1508_v11 }
 0x9b4   : > { %3237 = vmatprep.mubr.msk.f32.mxu1 %vm3411_vm1, %v3410_v8  ;;  %3230 = vmatpush3.msra.mxu1 %v2999_v42 }
 0x9b5   : > { %3231 = vmatprep.subr.mxu1 %v3410_v8 }
 0x9b6   : > { %3232 = vmatpush3.msra.mxu1 %v2998_v43 }
 0x9b7   : > { %3233 = vmatprep.subr.mxu1 %v3410_v8 }
 0x9b8   : > { %3234 = vmatpush3.msra.mxu1 %v2997_v44 }
 0x9b9   : > { %3235 = vmatprep.subr.mxu1 %v3410_v8 }
 0x9ba   : > { %3236 = vmatpush3.msra.mxu1 %v2996_v45 }
 0x9bb   : > { %3240 = vmatprep.subr.mxu1 %v3410_v8 }
 0xa73   : > { %v1589_v22 = vpop.f32.mrf.mxu1 }
 0xa74   : > { %v1590_v24 = vadd.f32 %v2990_v21, %v1589_v22 }
 0xa75   : > { %v3209_v25 = vpop.f32.mrf.mxu1 }
 0xa76   : > { %v1594_v26 = vmul.f32 0.70710677, %v1590_v24  ;;  %v1593_v28 = vmul.f32 0.5, %v1590_v24 }
 0xa78   : > { %3376 = verf.f32 %v1594_v26 }
 0xa85   : > { %v3377_v27 = vpop.eup %3376 }
 0xa86   : > { %v1596_v29 = vadd.f32 1.0, %v3377_v27 }
 0xa88   : > { %v1597_v30 = vmul.f32 %v1596_v29, %v1593_v28 }
 0xa8a   : > { %3227 = vmatmul.mubr.msk.f32.vlgmr.msra.gmra.mxu0 %vm1613_vm5, %v1597_v30 }
 0xa8b   : > { %3252 = vmatprep.mubr.msk.f32.mxu0 %vm3411_vm1, %v3410_v8 }
 0xb4a   : > { %v1683_v23 = vpop.f32.mrf.mxu0 }
 0xb4b   : > { %v1684_v32 = vadd.f32 %v2992_v31, %v1683_v23 }
 0xb4c   : > { %v3228_v34 = vpop.f32.mrf.mxu0 }
 0xb4d   : > { %v1687_v35 = vadd.f32 %v1684_v32, %v1508_v11 }
 0xb4f   : > { %v1690_v36 = vsel %vm588_vm0, %v1687_v35, 0.0 }
 0xb50   : > { %1691 = vadd.xlane.f32.xlu0 %v1690_v36 }
 0xbd9   : > { %v1692_v37 = vpop.xlane.xlu0 %1691 }
 0xbda   : > { %v1693_v38 = vmul.f32 0.03125, %v1692_v37 }
 0xbdc   : > { %v1694_v39 = vsub.f32 %v1687_v35, %v1693_v38 }
 0xbde   : > { %v1695_v40 = vmul.f32 %v1694_v39, %v1694_v39 }
 0xbe0   : > { %v1696_v41 = vsel %vm588_vm0, %v1695_v40, 0.0 }
 0xbe1   : > { %1697 = vadd.xlane.f32.xlu0 %v1696_v41 }
 0xc6a   : > { %v1698_v46 = vpop.xlane.xlu0 %1697 }
 0xc6b   : > { %v1699_v47 = vmul.f32 0.03125, %v1698_v46 }
 0xc6d   : > { %v1700_v48 = vadd.f32 1e-12, %v1699_v47 }
 0xc6f   : > { %3378 = vrsqrt.f32 %v1700_v48 }
 0xc7c   : > { %v3379_v49 = vpop.eup %3378 }
 0xc7d   : > { %v1702_v51 = vmul.f32 %v3379_v49, %v1694_v39 }
 0xc7f   : > { %v1709_v53 = vmul.f32 %v2994_v50, %v1702_v51 }
 0xc81   : > { %v3779_v54 = vadd.f32 %v2995_v52, %v1709_v53 }
 0xc83   : > { %3238 = vmatmul.mubr.msk.f32.vlgmr.msra.gmra.mxu1 %vm588_vm0, %v3779_v54 }
 0xc84   : > { %3242 = vmatprep.mubr.msk.f32.mxu1 %vm3411_vm1, %v3410_v8 }
 0xd43   : > { %v1799_v56 = vpop.f32.mrf.mxu1 }
 0xd44   : > { %v3788_v57 = vadd.f32 %v3001_v55, %v1799_v56 }
 0xd45   : > { %v3239_v58 = vpop.f32.mrf.mxu1 }
 0xd46   : > { %1971 = vrot.lane.b32.xlu1 %v3788_v57, %s3414_s24  ;;  %1804 = vrot.lane.b32.xlu0 %v3788_v57, %s3413_s23  ;;  %s4027_s23 = smov 64   ;;  %s4028_s24 = smov 48  }
 0xd4a   : > { %1969 = vrot.lane.b32.xlu1 %v3788_v57, %s3416_s1  ;;  %2136 = vrot.lane.b32.xlu0 %v3788_v57, %s3417_s20  ;;  %s4030_s1 = smov 56  }
 0xd4e   : > { %2138 = vrot.lane.b32.xlu1 %v3788_v57, %s3415_s19  ;;  %2303 = vrot.lane.b32.xlu0 %v3788_v57, %s4025_s21  ;;  %s4029_s19 = smov 40   ;;  %s4034_s21 = sshll.u32 %s4036_s28, 3 }
 0xd52   : > { %2305 = vrot.lane.b32.xlu1 %v3788_v57, %s4026_s30  ;;  %s4031_s30 = smov 8  }
 0xdb8   : > { %v1972_v59 = vpop.permute.xlu1 %1971  ;;  %v1805_v60 = vpop.permute.xlu0 %1804 }
 0xdb9   : > { %3241 = vmatpush3.xpose.msk.msra.mxu1 %vm707_vm2, %v1805_v60  ;;  %3251 = vmatpush3.xpose.msk.msra.mxu0 %vm707_vm2, %v1972_v59  ;;  %v3018_v60 = vld [vmem:[%s3996_s6 + $0x38] sm:$0xff] }
 0xdba   : > { %3260 = vmatprep.subr.mxu0 %v3410_v8  ;;  %3245 = vmatprep.subr.mxu1 %v3410_v8 }
 0xdbc   : > { %v1970_v61 = vpop.permute.xlu1 %1969  ;;  %3243 = vmatmul.mubr.msk.f32.vlgmr.msra.gmra.mxu1 %vm707_vm2, %v3788_v57  ;;  %v2137_v63 = vpop.permute.xlu0 %2136 }
 0xdbd   : > { %3253 = vmatmul.mubr.msk.f32.vlgmr.msra.gmra.mxu0 %vm707_vm2, %v1970_v61  ;;  %3247 = vmatprep.mubr.msk.f32.mxu1 %vm3411_vm1, %v3410_v8  ;;  %v3017_v61 = vld [vmem:[%s3996_s6 + $0x30] sm:$0xff] }
 0xdbe   : > { %3262 = vmatprep.mubr.msk.f32.mxu0 %vm3411_vm1, %v3410_v8 }
 0xdc0   : > { %v2139_v62 = vpop.permute.xlu1 %2138  ;;  %v2304_v20 = vpop.permute.xlu0 %2303 }
 0xdc1   : > { %3261 = vmatpush3.xpose.msk.msra.mxu0 %vm707_vm2, %v2139_v62  ;;  %v3016_v62 = vld [vmem:[%s3996_s6 + $0x28] sm:$0xff] }
 0xdc2   : > { %3270 = vmatprep.subr.mxu0 %v3410_v8 }
 0xdc4   : > { %v2306_v0 = vpop.permute.xlu1 %2305  ;;  %3263 = vmatmul.mubr.msk.f32.vlgmr.msra.gmra.mxu0 %vm707_vm2, %v2137_v63 }
 0xdc5   : > { %3271 = vmatpush3.xpose.msk.msra.mxu0 %vm707_vm2, %v2306_v0  ;;  %3272 = vmatprep.mubr.msk.f32.mxu0 %vm3411_vm1, %v3410_v8  ;;  %v3015_v0 = vld [vmem:[%s3996_s6 + $0x20] sm:$0xff] }
 0xdc6   : > { %3280 = vmatprep.subr.mxu0 %v3410_v8 }
 0xdc8   : > { %3273 = vmatmul.mubr.msk.f32.vlgmr.msra.gmra.mxu0 %vm707_vm2, %v2304_v20 }
 0xdc9   : > { %3288 = vmatprep.mubr.msk.f32.mxu0 %vm3411_vm1, %v3410_v8  ;;  %3281 = vmatpush3.msra.mxu0 %v3018_v60 }
 0xdca   : > { %3282 = vmatprep.subr.mxu0 %v3410_v8 }
 0xdcb   : > { %3283 = vmatpush3.msra.mxu0 %v3017_v61 }
 0xdcc   : > { %3284 = vmatprep.subr.mxu0 %v3410_v8 }
 0xdcd   : > { %3285 = vmatpush3.msra.mxu0 %v3016_v62 }
 0xdce   : > { %3286 = vmatprep.subr.mxu0 %v3410_v8 }
 0xdcf   : > { %3287 = vmatpush3.msra.mxu0 %v3015_v0 }
 0xdd0   : > { %3302 = vmatprep.subr.mxu0 %v3410_v8 }
 0xe7c   : > { %v1876_v1 = vpop.f32.mrf.mxu1 }
 0xe7d   : > { %v1880_v2 = vmul.f32 0.35355338, %v1876_v1  ;;  %v2043_v3 = vpop.f32.mrf.mxu0 }
 0xe7e   : > { %v2047_v4 = vmul.f32 0.35355338, %v2043_v3  ;;  %v3244_v5 = vpop.f32.mrf.mxu1 }
 0xe7f   : > { %v3254_v6 = vpop.f32.mrf.mxu0  ;;  %v1881_v7 = vadd.f32 %v1880_v2, %v3595_v33 }
 0xe80   : > { %v2048_v9 = vadd.f32 %v2047_v4, %v3595_v33 }
 0xe81   : > { %v1882_v10 = vsel %vm707_vm2, %v1881_v7, -inf }
 0xe82   : > { %1883 = vmax.xlane.f32.xlu1 %v1882_v10  ;;  %v2049_v11 = vsel %vm707_vm2, %v2048_v9, -inf }
 0xe83   : > { %2050 = vmax.xlane.f32.xlu0 %v2049_v11 }
 0xe84   : > { %v2210_v12 = vpop.f32.mrf.mxu0 }
 0xe85   : > { %v2214_v13 = vmul.f32 0.35355338, %v2210_v12 }
 0xe86   : > { %v3264_v14 = vpop.f32.mrf.mxu0 }
 0xe87   : > { %v2215_v15 = vadd.f32 %v2214_v13, %v3595_v33  ;;  %v3020_v14 = vld [vmem:[%s3997_s7 + $0x1] ss:$0 sm:$0xff] }
 0xe88   : > { %v2377_v16 = vpop.f32.mrf.mxu0 }
 0xe89   : > { %v2381_v17 = vmul.f32 0.35355338, %v2377_v16  ;;  %v2216_v18 = vsel %vm707_vm2, %v2215_v15, -inf }
 0xe8a   : > { %2217 = vmax.xlane.f32.xlu0 %v2216_v18  ;;  %v3274_v19 = vpop.f32.mrf.mxu0 }
 0xe8b   : > { %v2382_v21 = vadd.f32 %v2381_v17, %v3595_v33 }
 0xe8d   : > { %v2383_v22 = vsel %vm707_vm2, %v2382_v21, -inf }
 0xe8e   : > { %2384 = vmax.xlane.f32.xlu0 %v2383_v22 }
 0xe93   : > { %1893 = vrot.lane.b32.xlu1 %v3788_v57, %s4027_s23  ;;  %s4032_s23 = smov 16  }
 0xf0b   : > { %v1884_v24 = vpop.xlane.xlu1 %1883 }
 0xf0c   : > { %v1885_v25 = vsub.f32 %v1881_v7, %v1884_v24  ;;  %v2051_v26 = vpop.xlane.xlu0 %2050 }
 0xf0d   : > { %v2052_v27 = vsub.f32 %v2048_v9, %v2051_v26 }
 0xf0e   : > { %v1886_v28 = vmul.f32 1.442695, %v1885_v25 }
 0xf0f   : > { %v2053_v29 = vmul.f32 1.442695, %v2052_v27  ;;  %v1894_v30 = vpop.permute.xlu1 %1893  ;;  %v3029_v27 = vld [vmem:[%s4000_s10 + $0x38] sm:$0xff] }
 0xf10   : > { %3380 = vpow2.f32 %v1886_v28  ;;  %3246 = vmatpush3.msra.mxu1 %v1894_v30  ;;  %v3028_v28 = vld [vmem:[%s4000_s10 + $0x30] sm:$0xff] }
 0xf11   : > { %3382 = vpow2.f32 %v2053_v29  ;;  %3255 = vmatprep.subr.mxu1 %v3410_v8  ;;  %v3026_v29 = vld [vmem:[%s4000_s10 + $0x20] sm:$0xff] }
 0xf13   : > { %v2218_v31 = vpop.xlane.xlu0 %2217 }
 0xf14   : > { %v2219_v33 = vsub.f32 %v2215_v15, %v2218_v31 }
 0xf16   : > { %v2220_v23 = vmul.f32 1.442695, %v2219_v33 }
 0xf17   : > { %v2385_v32 = vpop.xlane.xlu0 %2384 }
 0xf18   : > { %3384 = vpow2.f32 %v2220_v23  ;;  %v2386_v34 = vsub.f32 %v2382_v21, %v2385_v32  ;;  %v3024_v32 = vld [vmem:[%s3998_s8 + $0x1] ss:$0 sm:$0xff] }
 0xf1a   : > { %v2387_v35 = vmul.f32 1.442695, %v2386_v34 }
 0xf1c   : > { %3386 = vpow2.f32 %v2387_v35  ;;  %v3025_v35 = vld [vmem:[%s3999_s9 + $0x1] ss:$0 sm:$0xff] }
 0xf1d   : > { %v3381_v36 = vpop.eup %3380 }
 0xf1e   : > { %v3383_v37 = vpop.eup %3382  ;;  %v1888_v38 = vsel %vm707_vm2, %v3381_v36, 0.0 }
 0xf1f   : > { %1889 = vadd.xlane.f32.xlu1 %v1888_v38  ;;  %v2055_v39 = vsel %vm707_vm2, %v3383_v37, 0.0  ;;  %v3040_v38 = vld [vmem:[%s4002_s12 + $0x78] sm:$0xff] }
 0xf20   : > { %2056 = vadd.xlane.f32.xlu0 %v2055_v39  ;;  %v3039_v39 = vld [vmem:[%s4002_s12 + $0x70] sm:$0xff] }
 0xf25   : > { %v3385_v40 = vpop.eup %3384 }
 0xf26   : > { %v2222_v41 = vsel %vm707_vm2, %v3385_v40, 0.0 }
 0xf27   : > { %2223 = vadd.xlane.f32.xlu1 %v2222_v41  ;;  %v3037_v41 = vld [vmem:[%s4002_s12 + $0x60] sm:$0xff] }
 0xf29   : > { %v3387_v42 = vpop.eup %3386 }
 0xf2a   : > { %v2389_v43 = vsel %vm707_vm2, %v3387_v42, 0.0 }
 0xf2b   : > { %2390 = vadd.xlane.f32.xlu0 %v2389_v43  ;;  %v3035_v43 = vld [vmem:[%s4002_s12 + $0x50] sm:$0xff] }
 0xf38   : > { %2227 = vrot.lane.b32.xlu1 %v3788_v57, %s4028_s24  ;;  %s4033_s24 = smov 24  }
 0xf3c   : > { %2394 = vrot.lane.b32.xlu1 %v3788_v57, %s4029_s19 }
 0xf41   : > { %2060 = vrot.lane.b32.xlu0 %v3788_v57, %s4030_s1 }
 0xfa8   : > { %v1890_v44 = vpop.xlane.xlu1 %1889 }
 0xfa9   : > { %3388 = vrcp.f32 %v1890_v44  ;;  %v2057_v45 = vpop.xlane.xlu0 %2056  ;;  %v3034_v44 = vld [vmem:[%s4002_s12 + $0x48] sm:$0xff] }
 0xfaa   : > { %3390 = vrcp.f32 %v2057_v45  ;;  %v3033_v45 = vld [vmem:[%s4002_s12 + $0x40] sm:$0xff] }
 0xfb0   : > { %v2224_v46 = vpop.xlane.xlu1 %2223 }
 0xfb1   : > { %3392 = vrcp.f32 %v2224_v46  ;;  %v3031_v46 = vld [vmem:[%s4001_s11 + $0x1] ss:$0 sm:$0xff] }
 0xfb4   : > { %v2391_v47 = vpop.xlane.xlu0 %2390  ;;  %v2228_v52 = vpop.permute.xlu1 %2227 }
 0xfb5   : > { %3394 = vrcp.f32 %v2391_v47 }
 0xfb6   : > { %v3389_v48 = vpop.eup %3388 }
 0xfb7   : > { %v1892_v49 = vmul.f32 %v3389_v48, %v3381_v36  ;;  %v3391_v50 = vpop.eup %3390 }
 0xfb8   : > { %v2061_v51 = vpop.permute.xlu0 %2060  ;;  %v2059_v53 = vmul.f32 %v3391_v50, %v3383_v37  ;;  %v2395_v57 = vpop.permute.xlu1 %2394 }
 0xfb9   : > { %3248 = vmatmul.mubr.msk.f32.vlgmr.msra.gmra.mxu1 %vm707_vm2, %v1892_v49 }
 0xfba   : > { %3256 = vmatpush3.msra.mxu1 %v2061_v51  ;;  %3257 = vmatprep.mubr.msk.f32.mxu1 %vm3411_vm1, %v3410_v8 }
 0xfbb   : > { %3265 = vmatprep.subr.mxu1 %v3410_v8 }
 0xfbd   : > { %3258 = vmatmul.mubr.msk.f32.vlgmr.msra.gmra.mxu1 %vm707_vm2, %v2059_v53 }
 0xfbe   : > { %v3393_v55 = vpop.eup %3392  ;;  %3266 = vmatpush3.msra.mxu1 %v2228_v52  ;;  %3267 = vmatprep.mubr.msk.f32.mxu1 %vm3411_vm1, %v3410_v8 }
 0xfbf   : > { %3275 = vmatprep.subr.mxu1 %v3410_v8  ;;  %v2226_v56 = vmul.f32 %v3393_v55, %v3385_v40  ;;  %v3038_v40 = vld [vmem:[%s4002_s12 + $0x68] sm:$0xff] }
 0xfc1   : > { %3268 = vmatmul.mubr.msk.f32.vlgmr.msra.gmra.mxu1 %vm707_vm2, %v2226_v56  ;;  %v3042_v56 = vld [vmem:[%s4003_s13 + $0x1] ss:$0 sm:$0xff] }
 0xfc2   : > { %v3395_v58 = vpop.eup %3394  ;;  %3276 = vmatpush3.msra.mxu1 %v2395_v57  ;;  %3277 = vmatprep.mubr.msk.f32.mxu1 %vm3411_vm1, %v3410_v8 }
 0xfc3   : > { %v2393_v59 = vmul.f32 %v3395_v58, %v3387_v42  ;;  %3291 = vmatprep.subr.mxu1 %v3410_v8  ;;  %v3036_v42 = vld [vmem:[%s4002_s12 + $0x58] sm:$0xff] }
 0xfc5   : > { %3278 = vmatmul.mubr.msk.f32.vlgmr.msra.gmra.mxu1 %vm707_vm2, %v2393_v59 }
 0xfc6   : > { %3299 = vmatprep.mubr.msk.f32.mxu1 %vm3411_vm1, %v3410_v8  ;;  %3292 = vmatpush3.msra.mxu1 %v3029_v27 }
 0xfc7   : > { %3293 = vmatprep.subr.mxu1 %v3410_v8 }
 0xfc8   : > { %3294 = vmatpush3.msra.mxu1 %v3028_v28 }
 0xfc9   : > { %3295 = vmatprep.subr.mxu1 %v3410_v8 }
0x1079   : > { %v1965_v63 = vpop.f32.mrf.mxu1 }
0x107b   : > { %v3249_v20 = vpop.f32.mrf.mxu1 }
0x107d   : > { %v2132_v1 = vpop.f32.mrf.mxu1 }
0x107e   : > { %2471 = vrot.lane.b32.xlu1 %v2132_v1, %s4031_s30 }
0x107f   : > { %v3259_v2 = vpop.f32.mrf.mxu1 }
0x1080   : > { %v2819_v2 = vld [vmem:[%s4006_s16 + $0x18] sm:$0xff] }
0x1081   : > { %v2299_v3 = vpop.f32.mrf.mxu1 }
0x1082   : > { %2475 = vrot.lane.b32.xlu0 %v2299_v3, %s4032_s23  ;;  %v2818_v3 = vld [vmem:[%s4006_s16 + $0x10] sm:$0xff] }
0x1083   : > { %v3269_v4 = vpop.f32.mrf.mxu1 }
0x1084   : > { %v2817_v4 = vld [vmem:[%s4006_s16 + $0x8] sm:$0xff] }
0x1085   : > { %v2466_v5 = vpop.f32.mrf.mxu1 }
0x1086   : > { %2479 = vrot.lane.b32.xlu1 %v2466_v5, %s4033_s24  ;;  %v2816_v5 = vld [vmem:[%s4006_s16] sm:$0xff]  ;;  %s584_s24 = scalar_lea.vmem %s4008_s18, %s4034_s21 }
0x1087   : > { %v3279_v6 = vpop.f32.mrf.mxu1 }
0x10f0   : > { %v2472_v7 = vpop.permute.xlu1 %2471 }
0x10f1   : > { %v2482_v10 = vsel %vm707_vm2, %v1965_v63, %v2472_v7 }
0x10f4   : > { %v2476_v9 = vpop.permute.xlu0 %2475 }
0x10f5   : > { %v2483_v11 = vsel %vm1391_vm3, %v2482_v10, %v2476_v9 }
0x10f8   : > { %v2480_v12 = vpop.permute.xlu1 %2479 }
0x10f9   : > { %v2484_v13 = vsel %vm1393_vm4, %v2483_v11, %v2480_v12  ;;  %v3046_v11 = vld [vmem:[%s4004_s14 + $0x1] ss:$0 sm:$0xff] }
0x10fa   : > { %3289 = vmatmul.mubr.msk.f32.vlgmr.msra.gmra.mxu0 %vm588_vm0, %v2484_v13  ;;  %v3047_v13 = vld [vmem:[%s4005_s15 + $0x1] ss:$0 sm:$0xff] }
0x10fb   : > { %3318 = vmatprep.mubr.msk.f32.mxu0 %vm3411_vm1, %v3410_v8  ;;  %3303 = vmatpush3.msra.mxu0 %v3040_v38 }
0x10fc   : > { %3304 = vmatprep.subr.mxu0 %v3410_v8 }
0x10fd   : > { %3305 = vmatpush3.msra.mxu0 %v3039_v39 }
0x10fe   : > { %3306 = vmatprep.subr.mxu0 %v3410_v8 }
0x10ff   : > { %3307 = vmatpush3.msra.mxu0 %v3038_v40 }
0x1100   : > { %3308 = vmatprep.subr.mxu0 %v3410_v8 }
0x1101   : > { %3309 = vmatpush3.msra.mxu0 %v3037_v41 }
0x1102   : > { %3310 = vmatprep.subr.mxu0 %v3410_v8 }
0x1103   : > { %3311 = vmatpush3.msra.mxu0 %v3036_v42 }
0x1104   : > { %3312 = vmatprep.subr.mxu0 %v3410_v8 }
0x1105   : > { %3313 = vmatpush3.msra.mxu0 %v3035_v43 }
0x1106   : > { %3314 = vmatprep.subr.mxu0 %v3410_v8 }
0x1107   : > { %3315 = vmatpush3.msra.mxu0 %v3034_v44 }
0x1108   : > { %3316 = vmatprep.subr.mxu0 %v3410_v8 }
0x1109   : > { %3317 = vmatpush3.msra.mxu0 %v3033_v45 }
0x11ba   : > { %v2567_v15 = vpop.f32.mrf.mxu0 }
0x11bb   : > { %v2568_v16 = vadd.f32 %v3020_v14, %v2567_v15 }
0x11bc   : > { %v3290_v17 = vpop.f32.mrf.mxu0 }
0x11bd   : > { %v2571_v18 = vadd.f32 %v2568_v16, %v3779_v54  ;;  %v3027_v54 = vld [vmem:[%s4000_s10 + $0x28] sm:$0xff] }
0x11be   : > { %3296 = vmatpush3.msra.mxu1 %v3027_v54 }
0x11bf   : > { %v2576_v19 = vsel %vm588_vm0, %v2571_v18, 0.0  ;;  %3297 = vmatprep.subr.mxu1 %v3410_v8 }
0x11c0   : > { %2577 = vadd.xlane.f32.xlu0 %v2576_v19  ;;  %3298 = vmatpush3.msra.mxu1 %v3026_v29 }
0x11c1   : > { %3321 = vmatprep.subr.mxu1 %v3410_v8 }
0x1249   : > { %v2578_v21 = vpop.xlane.xlu0 %2577 }
0x124a   : > { %v2579_v22 = vmul.f32 0.03125, %v2578_v21 }
0x124c   : > { %v2580_v24 = vsub.f32 %v2571_v18, %v2579_v22 }
0x124e   : > { %v2581_v25 = vmul.f32 %v2580_v24, %v2580_v24 }
0x1250   : > { %v2582_v26 = vsel %vm588_vm0, %v2581_v25, 0.0 }
0x1251   : > { %2583 = vadd.xlane.f32.xlu1 %v2582_v26 }
0x12da   : > { %v2584_v30 = vpop.xlane.xlu1 %2583 }
0x12db   : > { %v2585_v31 = vmul.f32 0.03125, %v2584_v30 }
0x12dd   : > { %v2586_v33 = vadd.f32 1e-12, %v2585_v31 }
0x12df   : > { %3396 = vrsqrt.f32 %v2586_v33 }
0x12ec   : > { %v3397_v23 = vpop.eup %3396 }
0x12ed   : > { %v2588_v34 = vmul.f32 %v3397_v23, %v2580_v24 }
0x12ef   : > { %v2595_v36 = vmul.f32 %v3024_v32, %v2588_v34 }
0x12f1   : > { %v2602_v37 = vadd.f32 %v3025_v35, %v2595_v36 }
0x12f3   : > { %3300 = vmatmul.mubr.msk.f32.vlgmr.msra.gmra.mxu1 %vm588_vm0, %v2602_v37 }
0x12f4   : > { %3329 = vmatprep.mubr.msk.f32.mxu1 %vm3411_vm1, %v3410_v8  ;;  %3322 = vmatpush3.msra.mxu1 %v2819_v2 }
0x12f5   : > { %3323 = vmatprep.subr.mxu1 %v3410_v8 }
0x12f6   : > { %3324 = vmatpush3.msra.mxu1 %v2818_v3 }
0x12f7   : > { %3325 = vmatprep.subr.mxu1 %v3410_v8 }
0x12f8   : > { %3326 = vmatpush3.msra.mxu1 %v2817_v4 }
0x12f9   : > { %3327 = vmatprep.subr.mxu1 %v3410_v8  ;;  %v3048_v8 = vld [vmem:[%s4007_s17] ss:$0 sm:$0xff] }
0x12fa   : > { %3328 = vmatpush3.msra.mxu1 %v2816_v5 }
0x13b3   : > { %v2685_v47 = vpop.f32.mrf.mxu1 }
0x13b4   : > { %v2686_v48 = vadd.f32 %v3031_v46, %v2685_v47 }
0x13b5   : > { %v3301_v49 = vpop.f32.mrf.mxu1 }
0x13b6   : > { %v2690_v50 = vmul.f32 0.70710677, %v2686_v48  ;;  %v2689_v52 = vmul.f32 0.5, %v2686_v48 }
0x13b8   : > { %3398 = verf.f32 %v2690_v50 }
0x13c5   : > { %v3399_v51 = vpop.eup %3398 }
0x13c6   : > { %v2692_v53 = vadd.f32 1.0, %v3399_v51 }
0x13c8   : > { %v2693_v55 = vmul.f32 %v2692_v53, %v2689_v52 }
0x13ca   : > { %3319 = vmatmul.mubr.msk.f32.vlgmr.msra.gmra.mxu0 %vm1613_vm5, %v2693_v55 }
0x148a   : > { %v2780_v57 = vpop.f32.mrf.mxu0 }
0x148b   : > { %v2781_v58 = vadd.f32 %v3042_v56, %v2780_v57 }
0x148c   : > { %v3320_v59 = vpop.f32.mrf.mxu0 }
0x148d   : > { %v2784_v60 = vadd.f32 %v2781_v58, %v2602_v37 }
0x148f   : > { %v2789_v61 = vsel %vm588_vm0, %v2784_v60, 0.0 }
0x1490   : > { %2790 = vadd.xlane.f32.xlu0 %v2789_v61 }
0x1519   : > { %v2791_v62 = vpop.xlane.xlu0 %2790 }
0x151a   : > { %v2792_v63 = vmul.f32 0.03125, %v2791_v62 }
0x151c   : > { %v2793_v0 = vsub.f32 %v2784_v60, %v2792_v63 }
0x151e   : > { %v2794_v20 = vmul.f32 %v2793_v0, %v2793_v0 }
0x1520   : > { %v2795_v1 = vsel %vm588_vm0, %v2794_v20, 0.0 }
0x1521   : > { %2796 = vadd.xlane.f32.xlu0 %v2795_v1 }
0x15aa   : > { %v2797_v6 = vpop.xlane.xlu0 %2796 }
0x15ab   : > { %v2798_v7 = vmul.f32 0.03125, %v2797_v6 }
0x15ad   : > { %v2799_v9 = vadd.f32 1e-12, %v2798_v7 }
0x15af   : > { %3400 = vrsqrt.f32 %v2799_v9 }
0x15bc   : > { %v3401_v10 = vpop.eup %3400 }
0x15bd   : > { %v2801_v12 = vmul.f32 %v3401_v10, %v2793_v0 }
0x15bf   : > { %v2808_v14 = vmul.f32 %v3046_v11, %v2801_v12 }
0x15c1   : > { %v2815_v15 = vadd.f32 %v3047_v13, %v2808_v14 }
0x15c3   : > { %3330 = vmatmul.mubr.msk.f32.vlgmr.msra.gmra.mxu1 %vm588_vm0, %v2815_v15 }
0x1683   : > { %v2896_v16 = vpop.f32.mrf.mxu1 }
0x1684   : > { %v2897_v17 = vadd.f32 %v3048_v8, %v2896_v16 }
0x1685   : > { %v3331_v18 = vpop.f32.mrf.mxu1 }
0x1686   : > { %2900 = vst [vmem:[%s584_s24] sm:$0xff] %v2897_v17 }
0x1687 PF: > { %s28_s27 = sadd.s32 1, %s3408_s27  }
0x1688   : > { %p25_p4 = scmp.ge.s32.totalorder %s28_s27, 4  }
0x168a   :  { %27 = sbr.rel (!%p25_p4) target bundleno = 4 (0x4), region = 137 }

</bundles_post_ra>
